<compile_context>
chip_gen: v7x
topology: tpu7x:2x2x1
jax: 0.10.0
libtpu: 0.0.40
codegen_flags: <defaults>
</compile_context>

<pallas_src>
import jax
import jax.numpy as jnp
from jax import lax
from jax.experimental import pallas as pl
from jax.experimental.pallas import tpu as pltpu

# ----------------------- model hyper-parameters (small) -----------------------
DIM = 32
HEADS = 2
DIM_HEAD = 16
HD = HEADS * DIM_HEAD            # 32 (dim_inner)
DEPTH = 2
NUM_TOKENS = 64
NUM_MEM = 4                      # num_memory_tokens
SEQ_LEN = 8
SEQ_TOTAL = SEQ_LEN + NUM_MEM    # 12 (tokens + write memories; no read memories)
FF_MULT = 4
FF_INNER = int(DIM * FF_MULT * 2 / 3)   # 85, matches FeedForward()
FF_PAD = 128                     # lane-padded GEGLU inner dim
LOGITS_PAD = 128                 # lane-padded logits dim
ATTN_SCALE = DIM_HEAD ** -0.5


# --------------------------------- fused kernel ---------------------------------
def rmt_kernel(x_ref, wqkv_ref, wo_ref, w1_ref, w2_ref, wl_ref, bl_ref,
               logits_ref, wmem_ref):
    L = SEQ_TOTAL
    n = SEQ_LEN
    x = x_ref[0]                                            # (L, DIM) float32

    # ---- constants (iota-built, compile-time foldable) ----
    ri = lax.broadcasted_iota(jnp.int32, (L, L), 0)
    ci = lax.broadcasted_iota(jnp.int32, (L, L), 1)
    # custom causal mask (memory_not_causal=True, read_mem_length=0):
    #   token queries: causal over tokens, never attend to write memories;
    #   write-memory queries: attend to everything.
    keep = (ri >= n) | ((ci <= ri) & (ci < n))
    attn_bias = jnp.where(keep, 0.0, -1e30)                  # additive bias (L, L)

    # token_shift as a constant row-mixing matrix applied to the 2nd feature half:
    #   token rows take row i-1 (row 0 -> zero), write-memory rows stay identity.
    shift_sel = ((ri < n) & (ci == ri - 1)) | ((ri >= n) & (ci == ri))
    shift_mat = jnp.where(shift_sel, 1.0, 0.0)                # (L, L)
    is_2nd_half = lax.broadcasted_iota(jnp.int32, (L, DIM), 1) >= (DIM // 2)

    def token_shift(t):
        shifted = jnp.dot(shift_mat, t, preferred_element_type=jnp.float32)
        return jnp.where(is_2nd_half, shifted, t)

    def unit_rmsnorm(t):
        # gamma * sqrt(dim) is pre-folded into the downstream weights.
        # matches F.normalize eps=1e-12:  max(||x||, 1e-12) == sqrt(max(||x||^2, 1e-24))
        ss = jnp.sum(t * t, axis=-1, keepdims=True)
        return t * lax.rsqrt(jnp.maximum(ss, 1e-24))

    def gelu_tanh(t):
        # TODO(synk): tanh-approx GELU (torch F.gelu default is exact erf; |diff|~1e-3).
        c = 0.7978845608028654  # sqrt(2/pi)
        return 0.5 * t * (1.0 + jnp.tanh(c * (t + 0.044715 * t * t * t)))

    for l in range(DEPTH):                                    # static unroll
        # -------- attention --------
        xs = token_shift(x)
        xn = unit_rmsnorm(xs)
        qkv = jnp.dot(xn, wqkv_ref[l], preferred_element_type=jnp.float32)   # (L, 3*HD)
        o_heads = []
        for h in range(HEADS):                                # static unroll
            q = qkv[:, h * DIM_HEAD:(h + 1) * DIM_HEAD]
            k = qkv[:, HD + h * DIM_HEAD:HD + (h + 1) * DIM_HEAD]
            v = qkv[:, 2 * HD + h * DIM_HEAD:2 * HD + (h + 1) * DIM_HEAD]
            sim = lax.dot_general(q, k, (((1,), (1,)), ((), ())),
                                  preferred_element_type=jnp.float32) + attn_bias
            sim = sim - jnp.max(sim, axis=-1, keepdims=True)
            p = jnp.exp(sim)
            p = p * pl.reciprocal(jnp.sum(p, axis=-1, keepdims=True), approx=True)
            o_heads.append(jnp.dot(p, v, preferred_element_type=jnp.float32))
        o = jnp.concatenate(o_heads, axis=-1)                                 # (L, HD)
        x = x + jnp.dot(o, wo_ref[l], preferred_element_type=jnp.float32)

        # -------- feed-forward (GEGLU) --------
        xs = token_shift(x)
        xn = unit_rmsnorm(xs)
        h12 = jnp.dot(xn, w1_ref[l], preferred_element_type=jnp.float32)      # (L, 2*FF_PAD)
        a = h12[:, :FF_PAD]
        g = h12[:, FF_PAD:]
        hg = a * gelu_tanh(g)                        # padded lanes are exactly zero
        hn = unit_rmsnorm(hg)                        # sum over 128 lanes == sum over 85 true
        x = x + jnp.dot(hn, w2_ref[l], preferred_element_type=jnp.float32)

    # -------- logits (token rows) + write memories --------
    tok = x[:n]                                                               # (n, DIM)
    tn = unit_rmsnorm(tok)
    logits_ref[0] = (jnp.dot(tn, wl_ref[...], preferred_element_type=jnp.float32)
                     + bl_ref[...])                                           # (n, 128)
    wmem_ref[0] = x[n:]                                                       # (NUM_MEM, DIM)


# --------------------------- weight folding / stacking ---------------------------
def _prepare_weights(params):
    """Fold RMSNorm gamma*sqrt(dim) and the attention scale into the weights,
    pad FF inner and logits dims to 128 lanes, stack per-layer weights."""
    sdim = DIM ** 0.5
    sinner = FF_INNER ** 0.5            # keep true feature count for the padded norm
    wqkv_l, wo_l, w1_l, w2_l = [], [], [], []
    for layer in params['layers']:
        a, f = layer['attn'], layer['ff']
        nscale = (a['gamma'] * sdim)[:, None]                         # (DIM, 1)
        wq = a['wq'] * ATTN_SCALE                                     # fold softmax scale
        wqkv_l.append(jnp.concatenate([wq, a['wkv']], axis=-1) * nscale)   # (DIM, 3*HD)
        wo_l.append(a['wo'])                                          # (HD, DIM)

        g1 = (f['g1'] * sdim)[:, None]                                # (DIM, 1)
        w1x = jnp.pad(f['w1'][:, :FF_INNER], ((0, 0), (0, FF_PAD - FF_INNER)))
        w1g = jnp.pad(f['w1'][:, FF_INNER:], ((0, 0), (0, FF_PAD - FF_INNER)))
        w1_l.append(jnp.concatenate([w1x, w1g], axis=-1) * g1)        # (DIM, 2*FF_PAD)
        w2s = f['w2'] * (f['g2'] * sinner)[:, None]                   # fold g2 * sqrt(85)
        w2_l.append(jnp.pad(w2s, ((0, FF_PAD - FF_INNER), (0, 0))))   # (FF_PAD, DIM)

    tl = params['to_logits']
    wl = tl['w'] * (tl['gamma'] * DIM ** 0.5)[:, None]
    wl = jnp.pad(wl, ((0, 0), (0, LOGITS_PAD - NUM_TOKENS)))          # (DIM, 128)
    bl = jnp.pad(tl['b'][None, :], ((0, 0), (0, LOGITS_PAD - NUM_TOKENS)))  # (1, 128)
    return (jnp.stack(wqkv_l), jnp.stack(wo_l), jnp.stack(w1_l), jnp.stack(w2_l), wl, bl)


# --------------------------------- forward wrapper ---------------------------------
def rmt_forward(params, tokens):
    """RecurrentMemoryTransformer forward (default call: no read_memories / mask /
    labels / xl_memories).  Returns (logits, write_memories, next_xl_memories=None)."""
    b, n = tokens.shape
    assert n == SEQ_LEN
    # glue (plain JAX): embedding gather + abs pos emb + write-memory concat.
    # frac_gradient(x, 0.1) is the identity in the forward pass.
    x = params['token_emb'][tokens] + params['pos_emb'][:n]
    write_mem = jnp.broadcast_to(params['memory_tokens'][None], (b, NUM_MEM, DIM))
    x = jnp.concatenate([x, write_mem], axis=1).astype(jnp.float32)   # (b, L, DIM)
    L = SEQ_TOTAL

    wqkv, wo, w1, w2, wl, bl = _prepare_weights(params)

    def full(shape):
        nd = len(shape)
        return pl.BlockSpec(shape, lambda i, _nd=nd: (0,) * _nd)

    logits_pad, write_memories = pl.pallas_call(
        rmt_kernel,
        out_shape=(jax.ShapeDtypeStruct((b, n, LOGITS_PAD), jnp.float32),
                   jax.ShapeDtypeStruct((b, NUM_MEM, DIM), jnp.float32)),
        grid=(b,),
        in_specs=[
            pl.BlockSpec((1, L, DIM), lambda i: (i, 0, 0)),   # activations: one batch element
            full(wqkv.shape), full(wo.shape), full(w1.shape), full(w2.shape),
            full(wl.shape), full(bl.shape),                   # weights: resident in VMEM
        ],
        out_specs=(pl.BlockSpec((1, n, LOGITS_PAD), lambda i: (i, 0, 0)),
                   pl.BlockSpec((1, NUM_MEM, DIM), lambda i: (i, 0, 0))),
        compiler_params=pltpu.CompilerParams(dimension_semantics=("parallel",)),
    )(x, wqkv, wo, w1, w2, wl, bl)

    logits = logits_pad[:, :, :NUM_TOKENS]
    # TODO(synk): xl-memory return path unused (use_xl_memories=False default).
    return logits, write_memories, None


# --------------------------------- deterministic init ---------------------------------
def init_params(key):
    keys = iter(jax.random.split(key, 3 + DEPTH * 5 + 2))

    def nrm(shape, std=0.02):
        return jax.random.normal(next(keys), shape, jnp.float32) * std

    params = {
        'token_emb': nrm((NUM_TOKENS, DIM)),
        'pos_emb': nrm((SEQ_LEN, DIM)),
        'memory_tokens': nrm((NUM_MEM, DIM)),
        'layers': [],
    }
    for _ in range(DEPTH):
        attn = {
            'gamma': jnp.ones((DIM,), jnp.float32),
            'wq': nrm((DIM, HD)),            # to_q:  (dim, dim_inner)
            'wkv': nrm((DIM, 2 * HD)),       # to_kv: (dim, 2*dim_inner), [k | v]
            'wo': nrm((HD, DIM)),            # to_out
        }
        ff = {
            'g1': jnp.ones((DIM,), jnp.float32),
            'w1': nrm((DIM, 2 * FF_INNER)),  # GEGLU: [value | gate]
            'g2': jnp.ones((FF_INNER,), jnp.float32),
            'w2': nrm((FF_INNER, DIM)),
        }
        params['layers'].append({'attn': attn, 'ff': ff})
    params['to_logits'] = {
        'gamma': jnp.ones((DIM,), jnp.float32),
        'w': nrm((DIM, NUM_TOKENS)),
        'b': nrm((NUM_TOKENS,)),             # nn.Linear in to_logits has bias
    }
    return params


# --------------------------------------- main ---------------------------------------
if __name__ == "__main__":
    key = jax.random.PRNGKey(0)
    pkey, tkey = jax.random.split(key)
    params = init_params(pkey)
    tokens = jax.random.randint(tkey, (2, SEQ_LEN), 0, NUM_TOKENS, dtype=jnp.int32)

    logits, write_memories, _ = jax.jit(rmt_forward)(params, tokens)
    jax.block_until_ready((logits, write_memories))

    assert logits.shape == (2, SEQ_LEN, NUM_TOKENS)
    assert write_memories.shape == (2, NUM_MEM, DIM)
    assert bool(jnp.all(jnp.isfinite(logits)))
    print("KERNEL_OK")
</pallas_src>

<mosaic_0001>
module attributes {stable_mosaic.version = 11 : i64} {
  func.func @rmt_kernel(%arg0: i32, %arg1: memref<1x12x32xf32, #tpu.memory_space<vmem>>, %arg2: memref<2x32x96xf32, #tpu.memory_space<vmem>>, %arg3: memref<2x32x32xf32, #tpu.memory_space<vmem>>, %arg4: memref<2x32x256xf32, #tpu.memory_space<vmem>>, %arg5: memref<2x128x32xf32, #tpu.memory_space<vmem>>, %arg6: memref<32x128xf32, #tpu.memory_space<vmem>>, %arg7: memref<1x128xf32, #tpu.memory_space<vmem>>, %arg8: memref<1x8x128xf32, #tpu.memory_space<vmem>>, %arg9: memref<1x4x32xf32, #tpu.memory_space<vmem>>) attributes {dimension_semantics = [#tpu.dimension_semantics<parallel>], iteration_bounds = array<i64: 2>, scalar_prefetch = 0 : i64, scratch_operands = 0 : i64, tpu.core_type = #tpu.core_type<tc>, window_params = [{transform_indices = @transform_0, window_bounds = array<i64: 1, 12, 32>}, {pipeline_mode = #tpu.pipeline_mode<synchronous>, transform_indices = @transform_1, window_bounds = array<i64: 2, 32, 96>}, {pipeline_mode = #tpu.pipeline_mode<synchronous>, transform_indices = @transform_2, window_bounds = array<i64: 2, 32, 32>}, {pipeline_mode = #tpu.pipeline_mode<synchronous>, transform_indices = @transform_3, window_bounds = array<i64: 2, 32, 256>}, {pipeline_mode = #tpu.pipeline_mode<synchronous>, transform_indices = @transform_4, window_bounds = array<i64: 2, 128, 32>}, {pipeline_mode = #tpu.pipeline_mode<synchronous>, transform_indices = @transform_5, window_bounds = array<i64: 32, 128>}, {pipeline_mode = #tpu.pipeline_mode<synchronous>, transform_indices = @transform_6, window_bounds = array<i64: 1, 128>}, {transform_indices = @transform_7, window_bounds = array<i64: 1, 8, 128>}, {transform_indices = @transform_8, window_bounds = array<i64: 1, 4, 32>}]} {
    %c0 = arith.constant 0 : index
    %c0_0 = arith.constant 0 : index
    %c0_1 = arith.constant 0 : index
    %0 = vector.load %arg1[%c0, %c0_0, %c0_1] : memref<1x12x32xf32, #tpu.memory_space<vmem>>, vector<1x12x32xf32>
    %1 = vector.shape_cast %0 : vector<1x12x32xf32> to vector<12x32xf32>
    %2 = tpu.iota {dimensions = array<i32: 0>} : vector<12x12xi32>
    %3 = tpu.iota {dimensions = array<i32: 1>} : vector<12x12xi32>
    %c8_i32 = arith.constant 8 : i32
    %4 = vector.broadcast %c8_i32 : i32 to vector<12x12xi32>
    %5 = arith.cmpi sge, %2, %4 : vector<12x12xi32>
    %6 = arith.cmpi sle, %3, %2 : vector<12x12xi32>
    %c8_i32_2 = arith.constant 8 : i32
    %7 = vector.broadcast %c8_i32_2 : i32 to vector<12x12xi32>
    %8 = arith.cmpi slt, %3, %7 : vector<12x12xi32>
    %9 = arith.andi %6, %8 : vector<12x12xi1>
    %10 = arith.ori %5, %9 : vector<12x12xi1>
    %cst = arith.constant 0.000000e+00 : f32
    %cst_3 = arith.constant -1.000000e+30 : f32
    %11 = vector.broadcast %cst : f32 to vector<12x12xf32>
    %12 = vector.broadcast %cst_3 : f32 to vector<12x12xf32>
    %13 = arith.select %10, %11, %12 : vector<12x12xi1>, vector<12x12xf32>
    %c8_i32_4 = arith.constant 8 : i32
    %14 = vector.broadcast %c8_i32_4 : i32 to vector<12x12xi32>
    %15 = arith.cmpi slt, %2, %14 : vector<12x12xi32>
    %c1_i32 = arith.constant 1 : i32
    %16 = vector.broadcast %c1_i32 : i32 to vector<12x12xi32>
    %17 = arith.subi %2, %16 : vector<12x12xi32>
    %18 = arith.cmpi eq, %3, %17 : vector<12x12xi32>
    %19 = arith.andi %15, %18 : vector<12x12xi1>
    %c8_i32_5 = arith.constant 8 : i32
    %20 = vector.broadcast %c8_i32_5 : i32 to vector<12x12xi32>
    %21 = arith.cmpi sge, %2, %20 : vector<12x12xi32>
    %22 = arith.cmpi eq, %3, %2 : vector<12x12xi32>
    %23 = arith.andi %21, %22 : vector<12x12xi1>
    %24 = arith.ori %19, %23 : vector<12x12xi1>
    %cst_6 = arith.constant 1.000000e+00 : f32
    %cst_7 = arith.constant 0.000000e+00 : f32
    %25 = vector.broadcast %cst_6 : f32 to vector<12x12xf32>
    %26 = vector.broadcast %cst_7 : f32 to vector<12x12xf32>
    %27 = arith.select %24, %25, %26 : vector<12x12xi1>, vector<12x12xf32>
    %28 = tpu.iota {dimensions = array<i32: 1>} : vector<12x32xi32>
    %c16_i32 = arith.constant 16 : i32
    %29 = vector.broadcast %c16_i32 : i32 to vector<12x32xi32>
    %30 = arith.cmpi sge, %28, %29 : vector<12x32xi32>
    %cst_8 = arith.constant dense<0.000000e+00> : vector<12x32xf32>
    %31 = tpu.matmul %27, %1, %cst_8 {dimension_numbers = #tpu.dot_dimension_numbers<[1], [0], [0], [1], [0, 0, 1, 1], [], []>} : vector<12x12xf32>, vector<12x32xf32>, vector<12x32xf32> -> vector<12x32xf32>
    %32 = arith.select %30, %31, %1 : vector<12x32xi1>, vector<12x32xf32>
    %33 = arith.mulf %32, %32 : vector<12x32xf32>
    %cst_9 = arith.constant dense<0.000000e+00> : vector<12xf32>
    %34 = vector.multi_reduction <add>, %33, %cst_9 [1] : vector<12x32xf32> to vector<12xf32>
    %35 = vector.shape_cast %34 : vector<12xf32> to vector<12x1xf32>
    %cst_10 = arith.constant 1.000000e-24 : f32
    %36 = vector.broadcast %cst_10 : f32 to vector<12x1xf32>
    %37 = arith.maximumf %35, %36 : vector<12x1xf32>
    %38 = math.rsqrt %37 : vector<12x1xf32>
    %39 = vector.broadcast %38 : vector<12x1xf32> to vector<12x32xf32>
    %40 = arith.mulf %32, %39 : vector<12x32xf32>
    %c0_11 = arith.constant 0 : index
    %c0_12 = arith.constant 0 : index
    %c0_13 = arith.constant 0 : index
    %41 = vector.load %arg2[%c0_11, %c0_12, %c0_13] : memref<2x32x96xf32, #tpu.memory_space<vmem>>, vector<1x32x96xf32>
    %42 = vector.shape_cast %41 : vector<1x32x96xf32> to vector<32x96xf32>
    %cst_14 = arith.constant dense<0.000000e+00> : vector<12x96xf32>
    %43 = tpu.matmul %40, %42, %cst_14 {dimension_numbers = #tpu.dot_dimension_numbers<[1], [0], [0], [1], [0, 0, 1, 1], [], []>} : vector<12x32xf32>, vector<32x96xf32>, vector<12x96xf32> -> vector<12x96xf32>
    %44 = vector.extract_strided_slice %43 {offsets = [0, 0], sizes = [12, 16], strides = [1, 1]} : vector<12x96xf32> to vector<12x16xf32>
    %45 = vector.extract_strided_slice %43 {offsets = [0, 32], sizes = [12, 16], strides = [1, 1]} : vector<12x96xf32> to vector<12x16xf32>
    %46 = vector.extract_strided_slice %43 {offsets = [0, 64], sizes = [12, 16], strides = [1, 1]} : vector<12x96xf32> to vector<12x16xf32>
    %cst_15 = arith.constant dense<0.000000e+00> : vector<12x12xf32>
    %47 = tpu.matmul %44, %45, %cst_15 {dimension_numbers = #tpu.dot_dimension_numbers<[1], [1], [0], [0], [0, 0, 1, 0], [], []>} : vector<12x16xf32>, vector<12x16xf32>, vector<12x12xf32> -> vector<12x12xf32>
    %48 = arith.addf %47, %13 : vector<12x12xf32>
    %cst_16 = arith.constant dense<0xFF800000> : vector<12xf32>
    %49 = vector.multi_reduction <maximumf>, %48, %cst_16 [1] : vector<12x12xf32> to vector<12xf32>
    %50 = vector.shape_cast %49 : vector<12xf32> to vector<12x1xf32>
    %51 = vector.broadcast %50 : vector<12x1xf32> to vector<12x12xf32>
    %52 = arith.subf %48, %51 : vector<12x12xf32>
    %53 = math.exp %52 : vector<12x12xf32>
    %cst_17 = arith.constant dense<0.000000e+00> : vector<12xf32>
    %54 = vector.multi_reduction <add>, %53, %cst_17 [1] : vector<12x12xf32> to vector<12xf32>
    %55 = vector.shape_cast %54 : vector<12xf32> to vector<12x1xf32>
    %56 = tpu.reciprocal %55 {approx = true} : vector<12x1xf32> -> vector<12x1xf32>
    %57 = vector.broadcast %56 : vector<12x1xf32> to vector<12x12xf32>
    %58 = arith.mulf %53, %57 : vector<12x12xf32>
    %cst_18 = arith.constant dense<0.000000e+00> : vector<12x16xf32>
    %59 = tpu.matmul %58, %46, %cst_18 {dimension_numbers = #tpu.dot_dimension_numbers<[1], [0], [0], [1], [0, 0, 1, 1], [], []>} : vector<12x12xf32>, vector<12x16xf32>, vector<12x16xf32> -> vector<12x16xf32>
    %60 = vector.extract_strided_slice %43 {offsets = [0, 16], sizes = [12, 16], strides = [1, 1]} : vector<12x96xf32> to vector<12x16xf32>
    %61 = vector.extract_strided_slice %43 {offsets = [0, 48], sizes = [12, 16], strides = [1, 1]} : vector<12x96xf32> to vector<12x16xf32>
    %62 = vector.extract_strided_slice %43 {offsets = [0, 80], sizes = [12, 16], strides = [1, 1]} : vector<12x96xf32> to vector<12x16xf32>
    %cst_19 = arith.constant dense<0.000000e+00> : vector<12x12xf32>
    %63 = tpu.matmul %60, %61, %cst_19 {dimension_numbers = #tpu.dot_dimension_numbers<[1], [1], [0], [0], [0, 0, 1, 0], [], []>} : vector<12x16xf32>, vector<12x16xf32>, vector<12x12xf32> -> vector<12x12xf32>
    %64 = arith.addf %63, %13 : vector<12x12xf32>
    %cst_20 = arith.constant dense<0xFF800000> : vector<12xf32>
    %65 = vector.multi_reduction <maximumf>, %64, %cst_20 [1] : vector<12x12xf32> to vector<12xf32>
    %66 = vector.shape_cast %65 : vector<12xf32> to vector<12x1xf32>
    %67 = vector.broadcast %66 : vector<12x1xf32> to vector<12x12xf32>
    %68 = arith.subf %64, %67 : vector<12x12xf32>
    %69 = math.exp %68 : vector<12x12xf32>
    %cst_21 = arith.constant dense<0.000000e+00> : vector<12xf32>
    %70 = vector.multi_reduction <add>, %69, %cst_21 [1] : vector<12x12xf32> to vector<12xf32>
    %71 = vector.shape_cast %70 : vector<12xf32> to vector<12x1xf32>
    %72 = tpu.reciprocal %71 {approx = true} : vector<12x1xf32> -> vector<12x1xf32>
    %73 = vector.broadcast %72 : vector<12x1xf32> to vector<12x12xf32>
    %74 = arith.mulf %69, %73 : vector<12x12xf32>
    %cst_22 = arith.constant dense<0.000000e+00> : vector<12x16xf32>
    %75 = tpu.matmul %74, %62, %cst_22 {dimension_numbers = #tpu.dot_dimension_numbers<[1], [0], [0], [1], [0, 0, 1, 1], [], []>} : vector<12x12xf32>, vector<12x16xf32>, vector<12x16xf32> -> vector<12x16xf32>
    %76 = tpu.concatenate %59, %75 in 1 : vector<12x16xf32>, vector<12x16xf32> -> vector<12x32xf32>
    %c0_23 = arith.constant 0 : index
    %c0_24 = arith.constant 0 : index
    %c0_25 = arith.constant 0 : index
    %77 = vector.load %arg3[%c0_23, %c0_24, %c0_25] : memref<2x32x32xf32, #tpu.memory_space<vmem>>, vector<1x32x32xf32>
    %78 = vector.shape_cast %77 : vector<1x32x32xf32> to vector<32x32xf32>
    %cst_26 = arith.constant dense<0.000000e+00> : vector<12x32xf32>
    %79 = tpu.matmul %76, %78, %cst_26 {dimension_numbers = #tpu.dot_dimension_numbers<[1], [0], [0], [1], [0, 0, 1, 1], [], []>} : vector<12x32xf32>, vector<32x32xf32>, vector<12x32xf32> -> vector<12x32xf32>
    %80 = arith.addf %1, %79 : vector<12x32xf32>
    %cst_27 = arith.constant dense<0.000000e+00> : vector<12x32xf32>
    %81 = tpu.matmul %27, %80, %cst_27 {dimension_numbers = #tpu.dot_dimension_numbers<[1], [0], [0], [1], [0, 0, 1, 1], [], []>} : vector<12x12xf32>, vector<12x32xf32>, vector<12x32xf32> -> vector<12x32xf32>
    %82 = arith.select %30, %81, %80 : vector<12x32xi1>, vector<12x32xf32>
    %83 = arith.mulf %82, %82 : vector<12x32xf32>
    %cst_28 = arith.constant dense<0.000000e+00> : vector<12xf32>
    %84 = vector.multi_reduction <add>, %83, %cst_28 [1] : vector<12x32xf32> to vector<12xf32>
    %85 = vector.shape_cast %84 : vector<12xf32> to vector<12x1xf32>
    %cst_29 = arith.constant 1.000000e-24 : f32
    %86 = vector.broadcast %cst_29 : f32 to vector<12x1xf32>
    %87 = arith.maximumf %85, %86 : vector<12x1xf32>
    %88 = math.rsqrt %87 : vector<12x1xf32>
    %89 = vector.broadcast %88 : vector<12x1xf32> to vector<12x32xf32>
    %90 = arith.mulf %82, %89 : vector<12x32xf32>
    %c0_30 = arith.constant 0 : index
    %c0_31 = arith.constant 0 : index
    %c0_32 = arith.constant 0 : index
    %91 = vector.load %arg4[%c0_30, %c0_31, %c0_32] : memref<2x32x256xf32, #tpu.memory_space<vmem>>, vector<1x32x256xf32>
    %92 = vector.shape_cast %91 : vector<1x32x256xf32> to vector<32x256xf32>
    %cst_33 = arith.constant dense<0.000000e+00> : vector<12x256xf32>
    %93 = tpu.matmul %90, %92, %cst_33 {dimension_numbers = #tpu.dot_dimension_numbers<[1], [0], [0], [1], [0, 0, 1, 1], [], []>} : vector<12x32xf32>, vector<32x256xf32>, vector<12x256xf32> -> vector<12x256xf32>
    %94 = vector.extract_strided_slice %93 {offsets = [0, 0], sizes = [12, 128], strides = [1, 1]} : vector<12x256xf32> to vector<12x128xf32>
    %95 = vector.extract_strided_slice %93 {offsets = [0, 128], sizes = [12, 128], strides = [1, 1]} : vector<12x256xf32> to vector<12x128xf32>
    %cst_34 = arith.constant 5.000000e-01 : f32
    %96 = vector.broadcast %cst_34 : f32 to vector<12x128xf32>
    %97 = arith.mulf %96, %95 : vector<12x128xf32>
    %cst_35 = arith.constant 4.471500e-02 : f32
    %98 = vector.broadcast %cst_35 : f32 to vector<12x128xf32>
    %99 = arith.mulf %98, %95 : vector<12x128xf32>
    %100 = arith.mulf %99, %95 : vector<12x128xf32>
    %101 = arith.mulf %100, %95 : vector<12x128xf32>
    %102 = arith.addf %95, %101 : vector<12x128xf32>
    %cst_36 = arith.constant 0.797884583 : f32
    %103 = vector.broadcast %cst_36 : f32 to vector<12x128xf32>
    %104 = arith.mulf %103, %102 : vector<12x128xf32>
    %105 = math.tanh %104 : vector<12x128xf32>
    %cst_37 = arith.constant 1.000000e+00 : f32
    %106 = vector.broadcast %cst_37 : f32 to vector<12x128xf32>
    %107 = arith.addf %106, %105 : vector<12x128xf32>
    %108 = arith.mulf %97, %107 : vector<12x128xf32>
    %109 = arith.mulf %94, %108 : vector<12x128xf32>
    %110 = arith.mulf %109, %109 : vector<12x128xf32>
    %cst_38 = arith.constant dense<0.000000e+00> : vector<12xf32>
    %111 = vector.multi_reduction <add>, %110, %cst_38 [1] : vector<12x128xf32> to vector<12xf32>
    %112 = vector.shape_cast %111 : vector<12xf32> to vector<12x1xf32>
    %cst_39 = arith.constant 1.000000e-24 : f32
    %113 = vector.broadcast %cst_39 : f32 to vector<12x1xf32>
    %114 = arith.maximumf %112, %113 : vector<12x1xf32>
    %115 = math.rsqrt %114 : vector<12x1xf32>
    %116 = vector.broadcast %115 : vector<12x1xf32> to vector<12x128xf32>
    %117 = arith.mulf %109, %116 : vector<12x128xf32>
    %c0_40 = arith.constant 0 : index
    %c0_41 = arith.constant 0 : index
    %c0_42 = arith.constant 0 : index
    %118 = vector.load %arg5[%c0_40, %c0_41, %c0_42] : memref<2x128x32xf32, #tpu.memory_space<vmem>>, vector<1x128x32xf32>
    %119 = vector.shape_cast %118 : vector<1x128x32xf32> to vector<128x32xf32>
    %cst_43 = arith.constant dense<0.000000e+00> : vector<12x32xf32>
    %120 = tpu.matmul %117, %119, %cst_43 {dimension_numbers = #tpu.dot_dimension_numbers<[1], [0], [0], [1], [0, 0, 1, 1], [], []>} : vector<12x128xf32>, vector<128x32xf32>, vector<12x32xf32> -> vector<12x32xf32>
    %121 = arith.addf %80, %120 : vector<12x32xf32>
    %cst_44 = arith.constant dense<0.000000e+00> : vector<12x32xf32>
    %122 = tpu.matmul %27, %121, %cst_44 {dimension_numbers = #tpu.dot_dimension_numbers<[1], [0], [0], [1], [0, 0, 1, 1], [], []>} : vector<12x12xf32>, vector<12x32xf32>, vector<12x32xf32> -> vector<12x32xf32>
    %123 = arith.select %30, %122, %121 : vector<12x32xi1>, vector<12x32xf32>
    %124 = arith.mulf %123, %123 : vector<12x32xf32>
    %cst_45 = arith.constant dense<0.000000e+00> : vector<12xf32>
    %125 = vector.multi_reduction <add>, %124, %cst_45 [1] : vector<12x32xf32> to vector<12xf32>
    %126 = vector.shape_cast %125 : vector<12xf32> to vector<12x1xf32>
    %cst_46 = arith.constant 1.000000e-24 : f32
    %127 = vector.broadcast %cst_46 : f32 to vector<12x1xf32>
    %128 = arith.maximumf %126, %127 : vector<12x1xf32>
    %129 = math.rsqrt %128 : vector<12x1xf32>
    %130 = vector.broadcast %129 : vector<12x1xf32> to vector<12x32xf32>
    %131 = arith.mulf %123, %130 : vector<12x32xf32>
    %c1 = arith.constant 1 : index
    %c0_47 = arith.constant 0 : index
    %c0_48 = arith.constant 0 : index
    %132 = vector.load %arg2[%c1, %c0_47, %c0_48] : memref<2x32x96xf32, #tpu.memory_space<vmem>>, vector<1x32x96xf32>
    %133 = vector.shape_cast %132 : vector<1x32x96xf32> to vector<32x96xf32>
    %cst_49 = arith.constant dense<0.000000e+00> : vector<12x96xf32>
    %134 = tpu.matmul %131, %133, %cst_49 {dimension_numbers = #tpu.dot_dimension_numbers<[1], [0], [0], [1], [0, 0, 1, 1], [], []>} : vector<12x32xf32>, vector<32x96xf32>, vector<12x96xf32> -> vector<12x96xf32>
    %135 = vector.extract_strided_slice %134 {offsets = [0, 0], sizes = [12, 16], strides = [1, 1]} : vector<12x96xf32> to vector<12x16xf32>
    %136 = vector.extract_strided_slice %134 {offsets = [0, 32], sizes = [12, 16], strides = [1, 1]} : vector<12x96xf32> to vector<12x16xf32>
    %137 = vector.extract_strided_slice %134 {offsets = [0, 64], sizes = [12, 16], strides = [1, 1]} : vector<12x96xf32> to vector<12x16xf32>
    %cst_50 = arith.constant dense<0.000000e+00> : vector<12x12xf32>
    %138 = tpu.matmul %135, %136, %cst_50 {dimension_numbers = #tpu.dot_dimension_numbers<[1], [1], [0], [0], [0, 0, 1, 0], [], []>} : vector<12x16xf32>, vector<12x16xf32>, vector<12x12xf32> -> vector<12x12xf32>
    %139 = arith.addf %138, %13 : vector<12x12xf32>
    %cst_51 = arith.constant dense<0xFF800000> : vector<12xf32>
    %140 = vector.multi_reduction <maximumf>, %139, %cst_51 [1] : vector<12x12xf32> to vector<12xf32>
    %141 = vector.shape_cast %140 : vector<12xf32> to vector<12x1xf32>
    %142 = vector.broadcast %141 : vector<12x1xf32> to vector<12x12xf32>
    %143 = arith.subf %139, %142 : vector<12x12xf32>
    %144 = math.exp %143 : vector<12x12xf32>
    %cst_52 = arith.constant dense<0.000000e+00> : vector<12xf32>
    %145 = vector.multi_reduction <add>, %144, %cst_52 [1] : vector<12x12xf32> to vector<12xf32>
    %146 = vector.shape_cast %145 : vector<12xf32> to vector<12x1xf32>
    %147 = tpu.reciprocal %146 {approx = true} : vector<12x1xf32> -> vector<12x1xf32>
    %148 = vector.broadcast %147 : vector<12x1xf32> to vector<12x12xf32>
    %149 = arith.mulf %144, %148 : vector<12x12xf32>
    %cst_53 = arith.constant dense<0.000000e+00> : vector<12x16xf32>
    %150 = tpu.matmul %149, %137, %cst_53 {dimension_numbers = #tpu.dot_dimension_numbers<[1], [0], [0], [1], [0, 0, 1, 1], [], []>} : vector<12x12xf32>, vector<12x16xf32>, vector<12x16xf32> -> vector<12x16xf32>
    %151 = vector.extract_strided_slice %134 {offsets = [0, 16], sizes = [12, 16], strides = [1, 1]} : vector<12x96xf32> to vector<12x16xf32>
    %152 = vector.extract_strided_slice %134 {offsets = [0, 48], sizes = [12, 16], strides = [1, 1]} : vector<12x96xf32> to vector<12x16xf32>
    %153 = vector.extract_strided_slice %134 {offsets = [0, 80], sizes = [12, 16], strides = [1, 1]} : vector<12x96xf32> to vector<12x16xf32>
    %cst_54 = arith.constant dense<0.000000e+00> : vector<12x12xf32>
    %154 = tpu.matmul %151, %152, %cst_54 {dimension_numbers = #tpu.dot_dimension_numbers<[1], [1], [0], [0], [0, 0, 1, 0], [], []>} : vector<12x16xf32>, vector<12x16xf32>, vector<12x12xf32> -> vector<12x12xf32>
    %155 = arith.addf %154, %13 : vector<12x12xf32>
    %cst_55 = arith.constant dense<0xFF800000> : vector<12xf32>
    %156 = vector.multi_reduction <maximumf>, %155, %cst_55 [1] : vector<12x12xf32> to vector<12xf32>
    %157 = vector.shape_cast %156 : vector<12xf32> to vector<12x1xf32>
    %158 = vector.broadcast %157 : vector<12x1xf32> to vector<12x12xf32>
    %159 = arith.subf %155, %158 : vector<12x12xf32>
    %160 = math.exp %159 : vector<12x12xf32>
    %cst_56 = arith.constant dense<0.000000e+00> : vector<12xf32>
    %161 = vector.multi_reduction <add>, %160, %cst_56 [1] : vector<12x12xf32> to vector<12xf32>
    %162 = vector.shape_cast %161 : vector<12xf32> to vector<12x1xf32>
    %163 = tpu.reciprocal %162 {approx = true} : vector<12x1xf32> -> vector<12x1xf32>
    %164 = vector.broadcast %163 : vector<12x1xf32> to vector<12x12xf32>
    %165 = arith.mulf %160, %164 : vector<12x12xf32>
    %cst_57 = arith.constant dense<0.000000e+00> : vector<12x16xf32>
    %166 = tpu.matmul %165, %153, %cst_57 {dimension_numbers = #tpu.dot_dimension_numbers<[1], [0], [0], [1], [0, 0, 1, 1], [], []>} : vector<12x12xf32>, vector<12x16xf32>, vector<12x16xf32> -> vector<12x16xf32>
    %167 = tpu.concatenate %150, %166 in 1 : vector<12x16xf32>, vector<12x16xf32> -> vector<12x32xf32>
    %c1_58 = arith.constant 1 : index
    %c0_59 = arith.constant 0 : index
    %c0_60 = arith.constant 0 : index
    %168 = vector.load %arg3[%c1_58, %c0_59, %c0_60] : memref<2x32x32xf32, #tpu.memory_space<vmem>>, vector<1x32x32xf32>
    %169 = vector.shape_cast %168 : vector<1x32x32xf32> to vector<32x32xf32>
    %cst_61 = arith.constant dense<0.000000e+00> : vector<12x32xf32>
    %170 = tpu.matmul %167, %169, %cst_61 {dimension_numbers = #tpu.dot_dimension_numbers<[1], [0], [0], [1], [0, 0, 1, 1], [], []>} : vector<12x32xf32>, vector<32x32xf32>, vector<12x32xf32> -> vector<12x32xf32>
    %171 = arith.addf %121, %170 : vector<12x32xf32>
    %cst_62 = arith.constant dense<0.000000e+00> : vector<12x32xf32>
    %172 = tpu.matmul %27, %171, %cst_62 {dimension_numbers = #tpu.dot_dimension_numbers<[1], [0], [0], [1], [0, 0, 1, 1], [], []>} : vector<12x12xf32>, vector<12x32xf32>, vector<12x32xf32> -> vector<12x32xf32>
    %173 = arith.select %30, %172, %171 : vector<12x32xi1>, vector<12x32xf32>
    %174 = arith.mulf %173, %173 : vector<12x32xf32>
    %cst_63 = arith.constant dense<0.000000e+00> : vector<12xf32>
    %175 = vector.multi_reduction <add>, %174, %cst_63 [1] : vector<12x32xf32> to vector<12xf32>
    %176 = vector.shape_cast %175 : vector<12xf32> to vector<12x1xf32>
    %cst_64 = arith.constant 1.000000e-24 : f32
    %177 = vector.broadcast %cst_64 : f32 to vector<12x1xf32>
    %178 = arith.maximumf %176, %177 : vector<12x1xf32>
    %179 = math.rsqrt %178 : vector<12x1xf32>
    %180 = vector.broadcast %179 : vector<12x1xf32> to vector<12x32xf32>
    %181 = arith.mulf %173, %180 : vector<12x32xf32>
    %c1_65 = arith.constant 1 : index
    %c0_66 = arith.constant 0 : index
    %c0_67 = arith.constant 0 : index
    %182 = vector.load %arg4[%c1_65, %c0_66, %c0_67] : memref<2x32x256xf32, #tpu.memory_space<vmem>>, vector<1x32x256xf32>
    %183 = vector.shape_cast %182 : vector<1x32x256xf32> to vector<32x256xf32>
    %cst_68 = arith.constant dense<0.000000e+00> : vector<12x256xf32>
    %184 = tpu.matmul %181, %183, %cst_68 {dimension_numbers = #tpu.dot_dimension_numbers<[1], [0], [0], [1], [0, 0, 1, 1], [], []>} : vector<12x32xf32>, vector<32x256xf32>, vector<12x256xf32> -> vector<12x256xf32>
    %185 = vector.extract_strided_slice %184 {offsets = [0, 0], sizes = [12, 128], strides = [1, 1]} : vector<12x256xf32> to vector<12x128xf32>
    %186 = vector.extract_strided_slice %184 {offsets = [0, 128], sizes = [12, 128], strides = [1, 1]} : vector<12x256xf32> to vector<12x128xf32>
    %cst_69 = arith.constant 5.000000e-01 : f32
    %187 = vector.broadcast %cst_69 : f32 to vector<12x128xf32>
    %188 = arith.mulf %187, %186 : vector<12x128xf32>
    %cst_70 = arith.constant 4.471500e-02 : f32
    %189 = vector.broadcast %cst_70 : f32 to vector<12x128xf32>
    %190 = arith.mulf %189, %186 : vector<12x128xf32>
    %191 = arith.mulf %190, %186 : vector<12x128xf32>
    %192 = arith.mulf %191, %186 : vector<12x128xf32>
    %193 = arith.addf %186, %192 : vector<12x128xf32>
    %cst_71 = arith.constant 0.797884583 : f32
    %194 = vector.broadcast %cst_71 : f32 to vector<12x128xf32>
    %195 = arith.mulf %194, %193 : vector<12x128xf32>
    %196 = math.tanh %195 : vector<12x128xf32>
    %cst_72 = arith.constant 1.000000e+00 : f32
    %197 = vector.broadcast %cst_72 : f32 to vector<12x128xf32>
    %198 = arith.addf %197, %196 : vector<12x128xf32>
    %199 = arith.mulf %188, %198 : vector<12x128xf32>
    %200 = arith.mulf %185, %199 : vector<12x128xf32>
    %201 = arith.mulf %200, %200 : vector<12x128xf32>
    %cst_73 = arith.constant dense<0.000000e+00> : vector<12xf32>
    %202 = vector.multi_reduction <add>, %201, %cst_73 [1] : vector<12x128xf32> to vector<12xf32>
    %203 = vector.shape_cast %202 : vector<12xf32> to vector<12x1xf32>
    %cst_74 = arith.constant 1.000000e-24 : f32
    %204 = vector.broadcast %cst_74 : f32 to vector<12x1xf32>
    %205 = arith.maximumf %203, %204 : vector<12x1xf32>
    %206 = math.rsqrt %205 : vector<12x1xf32>
    %207 = vector.broadcast %206 : vector<12x1xf32> to vector<12x128xf32>
    %208 = arith.mulf %200, %207 : vector<12x128xf32>
    %c1_75 = arith.constant 1 : index
    %c0_76 = arith.constant 0 : index
    %c0_77 = arith.constant 0 : index
    %209 = vector.load %arg5[%c1_75, %c0_76, %c0_77] : memref<2x128x32xf32, #tpu.memory_space<vmem>>, vector<1x128x32xf32>
    %210 = vector.shape_cast %209 : vector<1x128x32xf32> to vector<128x32xf32>
    %cst_78 = arith.constant dense<0.000000e+00> : vector<12x32xf32>
    %211 = tpu.matmul %208, %210, %cst_78 {dimension_numbers = #tpu.dot_dimension_numbers<[1], [0], [0], [1], [0, 0, 1, 1], [], []>} : vector<12x128xf32>, vector<128x32xf32>, vector<12x32xf32> -> vector<12x32xf32>
    %212 = arith.addf %171, %211 : vector<12x32xf32>
    %213 = vector.extract_strided_slice %212 {offsets = [0, 0], sizes = [8, 32], strides = [1, 1]} : vector<12x32xf32> to vector<8x32xf32>
    %214 = arith.mulf %213, %213 : vector<8x32xf32>
    %cst_79 = arith.constant dense<0.000000e+00> : vector<8xf32>
    %215 = vector.multi_reduction <add>, %214, %cst_79 [1] : vector<8x32xf32> to vector<8xf32>
    %216 = vector.shape_cast %215 : vector<8xf32> to vector<8x1xf32>
    %cst_80 = arith.constant 1.000000e-24 : f32
    %217 = vector.broadcast %cst_80 : f32 to vector<8x1xf32>
    %218 = arith.maximumf %216, %217 : vector<8x1xf32>
    %219 = math.rsqrt %218 : vector<8x1xf32>
    %220 = vector.broadcast %219 : vector<8x1xf32> to vector<8x32xf32>
    %221 = arith.mulf %213, %220 : vector<8x32xf32>
    %c0_81 = arith.constant 0 : index
    %c0_82 = arith.constant 0 : index
    %222 = vector.load %arg6[%c0_81, %c0_82] : memref<32x128xf32, #tpu.memory_space<vmem>>, vector<32x128xf32>
    %cst_83 = arith.constant dense<0.000000e+00> : vector<8x128xf32>
    %223 = tpu.matmul %221, %222, %cst_83 {dimension_numbers = #tpu.dot_dimension_numbers<[1], [0], [0], [1], [0, 0, 1, 1], [], []>} : vector<8x32xf32>, vector<32x128xf32>, vector<8x128xf32> -> vector<8x128xf32>
    %c0_84 = arith.constant 0 : index
    %c0_85 = arith.constant 0 : index
    %224 = vector.load %arg7[%c0_84, %c0_85] : memref<1x128xf32, #tpu.memory_space<vmem>>, vector<1x128xf32>
    %225 = vector.broadcast %224 : vector<1x128xf32> to vector<8x128xf32>
    %226 = arith.addf %223, %225 : vector<8x128xf32>
    %c0_86 = arith.constant 0 : index
    %c0_87 = arith.constant 0 : index
    %c0_88 = arith.constant 0 : index
    %227 = vector.load %arg8[%c0_86, %c0_87, %c0_88] : memref<1x8x128xf32, #tpu.memory_space<vmem>>, vector<1x8x128xf32>
    %228 = vector.shape_cast %227 : vector<1x8x128xf32> to vector<8x128xf32>
    %229 = vector.shape_cast %226 : vector<8x128xf32> to vector<1x8x128xf32>
    tpu.vector_store %arg8[%c0_86, %c0_87, %c0_88], %229 {strides = array<i32>} : memref<1x8x128xf32, #tpu.memory_space<vmem>>, vector<1x8x128xf32>,
    %230 = vector.extract_strided_slice %212 {offsets = [8, 0], sizes = [4, 32], strides = [1, 1]} : vector<12x32xf32> to vector<4x32xf32>
    %c0_89 = arith.constant 0 : index
    %c0_90 = arith.constant 0 : index
    %c0_91 = arith.constant 0 : index
    %231 = vector.load %arg9[%c0_89, %c0_90, %c0_91] : memref<1x4x32xf32, #tpu.memory_space<vmem>>, vector<1x4x32xf32>
    %232 = vector.shape_cast %231 : vector<1x4x32xf32> to vector<4x32xf32>
    %233 = vector.shape_cast %230 : vector<4x32xf32> to vector<1x4x32xf32>
    tpu.vector_store %arg9[%c0_89, %c0_90, %c0_91], %233 {strides = array<i32>} : memref<1x4x32xf32, #tpu.memory_space<vmem>>, vector<1x4x32xf32>,
    return
  }
  func.func @transform_0(%arg0: i32) -> (i32, i32, i32) {
    %c0_i32 = arith.constant 0 : i32
    %c0_i32_0 = arith.constant 0 : i32
    %c0_i32_1 = arith.constant 0 : i32
    return %arg0, %c0_i32, %c0_i32_0 : i32, i32, i32
  }
  func.func @transform_1(%arg0: i32) -> (i32, i32, i32) {
    %c0_i32 = arith.constant 0 : i32
    %c0_i32_0 = arith.constant 0 : i32
    %c0_i32_1 = arith.constant 0 : i32
    %c0_i32_2 = arith.constant 0 : i32
    return %c0_i32, %c0_i32_0, %c0_i32_1 : i32, i32, i32
  }
  func.func @transform_2(%arg0: i32) -> (i32, i32, i32) {
    %c0_i32 = arith.constant 0 : i32
    %c0_i32_0 = arith.constant 0 : i32
    %c0_i32_1 = arith.constant 0 : i32
    %c0_i32_2 = arith.constant 0 : i32
    return %c0_i32, %c0_i32_0, %c0_i32_1 : i32, i32, i32
  }
  func.func @transform_3(%arg0: i32) -> (i32, i32, i32) {
    %c0_i32 = arith.constant 0 : i32
    %c0_i32_0 = arith.constant 0 : i32
    %c0_i32_1 = arith.constant 0 : i32
    %c0_i32_2 = arith.constant 0 : i32
    return %c0_i32, %c0_i32_0, %c0_i32_1 : i32, i32, i32
  }
  func.func @transform_4(%arg0: i32) -> (i32, i32, i32) {
    %c0_i32 = arith.constant 0 : i32
    %c0_i32_0 = arith.constant 0 : i32
    %c0_i32_1 = arith.constant 0 : i32
    %c0_i32_2 = arith.constant 0 : i32
    return %c0_i32, %c0_i32_0, %c0_i32_1 : i32, i32, i32
  }
  func.func @transform_5(%arg0: i32) -> (i32, i32) {
    %c0_i32 = arith.constant 0 : i32
    %c0_i32_0 = arith.constant 0 : i32
    %c0_i32_1 = arith.constant 0 : i32
    return %c0_i32, %c0_i32_0 : i32, i32
  }
  func.func @transform_6(%arg0: i32) -> (i32, i32) {
    %c0_i32 = arith.constant 0 : i32
    %c0_i32_0 = arith.constant 0 : i32
    %c0_i32_1 = arith.constant 0 : i32
    return %c0_i32, %c0_i32_0 : i32, i32
  }
  func.func @transform_7(%arg0: i32) -> (i32, i32, i32) {
    %c0_i32 = arith.constant 0 : i32
    %c0_i32_0 = arith.constant 0 : i32
    %c0_i32_1 = arith.constant 0 : i32
    return %arg0, %c0_i32, %c0_i32_0 : i32, i32, i32
  }
  func.func @transform_8(%arg0: i32) -> (i32, i32, i32) {
    %c0_i32 = arith.constant 0 : i32
    %c0_i32_0 = arith.constant 0 : i32
    %c0_i32_1 = arith.constant 0 : i32
    return %arg0, %c0_i32, %c0_i32_0 : i32, i32, i32
  }
}

</mosaic_0001>

<bundles_post_ra>
// kernel: rmt_forward.1
= control target key start
LH: loop header
LB: loop body
LE: loop exit
PB: predicated region body
PF: predicated region fallthrough
CT: control target
= control target key end

     0   :  { %14 = vsyncpa [#allocation3], 0  ;;  %s4071_s0 = inlined_call_operand.vmem [shape: f32[2,12,32], index: 0, kind: input, shape index: {}]   ;;  %s4072_s1 = inlined_call_operand.vmem [shape: f32[2,32,96], index: 1, kind: input, shape index: {}]   ;;  %s4073_s2 = inlined_call_operand.vmem [shape: f32[2,32,32], index: 2, kind: input, shape index: {}]   ;;  %s4074_s3 = inlined_call_operand.vmem [shape: f32[2,32,256], index: 3, kind: input, shape index: {}]   ;;  %s4075_s4 = inlined_call_operand.vmem [shape: f32[2,128,32], index: 4, kind: input, shape index: {}]   ;;  %s4076_s5 = inlined_call_operand.vmem [shape: f32[32,128], index: 5, kind: input, shape index: {}]   ;;  %s4077_s6 = inlined_call_operand.vmem [shape: f32[1,128], index: 6, kind: input, shape index: {}]   ;;  %s4078_s7 = inlined_call_operand.hbm [shape: f32[2,8,128], index: 7, kind: output, shape index: {0}]   ;;  %s4079_s8 = inlined_call_operand.hbm [shape: f32[2,4,32], index: 8, kind: output, shape index: {1}]  }
   0x1   :  { %16 = vsyncpa [#allocation3 + $0x1], 0 }
   0x2   :  { %17 = vsyncpa [#allocation5], 0 }
   0x3   :  { %19 = vsyncpa [#allocation5 + $0x1], 0  ;;  %s3486_s27 = smov 0   ;;  %s3488_s28 = smov 0  }
   0x4   :  { %s3490_s29 = smov 0   ;;  %s3492_s30 = smov 0  }
   0x5 LB: > { %s3507_s9 = sadd.s32 4294967295, %s3426_s30   ;;  %s2556_s10 = sadd.s32 4294967294, %s3426_s30   ;;  %s3426_s30 = sphi %s3492_s30, %s4099_s30   ;;  %s3422_s29 = sphi %s3490_s29, %s4098_s29   ;;  %s3418_s28 = sphi %s3488_s28, %s4097_s28   ;;  %s3414_s27 = sphi %s3486_s27, %s4096_s27  }
   0x6   : > { %s3511_s11 = sadd.s32 1, %s3426_s30   ;;  %s184_s12 = sadd.s32 1, %s3422_s29 }
   0x7   : > { %s181_s13 = ssub.s32 %s3426_s30, %s3511_s11  ;;  %p194_p0 = scmp.ne.s32.totalorder %s3422_s29, %s3418_s28 }
   0x8   : > { %p182_p1 = scmp.eq.s32.totalorder %s181_s13, 0  ;;  %p195_p2 = scmp.eq.s32.totalorder %s3507_s9, 1 }
   0x9   : > { %p200_p3 = scmp.ne.s32.totalorder %s3418_s28, %s3414_s27  ;;  %p201_p4 = scmp.eq.s32.totalorder %s2556_s10, 1 }
   0xa   : > { %s3522_s14 = scalar_select %p182_p1, %s3422_s29, %s184_s12  }
   0xb   : > { %p3524_p5 = por %p195_p2, %p194_p0  ;;  %p3528_p6 = por %p201_p4, %p200_p3 }
   0xc   : > { %p2559_p7 = scmp.ge.s32.totalorder %s3426_s30, 1  ;;  %p271_p8 = scmp.lt.s32.totalorder %s3426_s30, 3 }
   0xe   : > { %p272_p9 = pnand %p2559_p7, %p271_p8 }
   0xf   : > { %p310_p10 = scmp.lt.s32.totalorder (!%p272_p9), %s3507_s9, 1  ;;  %v317_v0 = vlaneseq (!%p272_p9)  ;;  %vm357_vm0 = vcmask (!%p272_p9), 1043456   ;;  %vm350_vm1 = vcmask (!%p272_p9), 97280   ;;  %vm3428_vm2 = vmmov (!%p272_p9), 1   ;;  %v454_v20 = vld [vmem:[%s4072_s1] sm:$0xff] (!%p272_p9)  ;;  %v455_v21 = vld [vmem:[%s4072_s1 + $0x8] sm:$0xff] (!%p272_p9) }
  0x10   : > { %275 = sbr.rel (%p272_p9) target bundleno = 6031 (0x178f), region = 48  ;;  %vm3550_vm3 = vmpackc.low (!%p272_p9), %vm357_vm0, %vm3428_vm2  ;;  %v3429_v9 = vmov (!%p272_p9), 0.0   ;;  %vm440_vm7 = vcmask (!%p272_p9), 261120   ;;  %vm444_vm8 = vcmask (!%p272_p9), 257024   ;;  %v456_v22 = vld [vmem:[%s4072_s1 + $0x10] sm:$0xff] (!%p272_p9)  ;;  %v2987_v23 = vpack.c.bf16 (!%p272_p9), %v455_v21, %v454_v20  ;;  %v457_v24 = vld [vmem:[%s4072_s1 + $0x18] sm:$0xff] (!%p272_p9) }
  0x11   : > { %v3536_v1 = vshrl.u32 (!%p272_p9), %v317_v0, 7  ;;  %v3538_v2 = vand.u32 (!%p272_p9), 127, %v317_v0  ;;  %v2991_v25 = vpack.c.bf16 (!%p272_p9), %v457_v24, %v456_v22  ;;  %vm545_vm9 = vcmask (!%p272_p9), 130048   ;;  %s3432_s19 = smov (!%p272_p9), 80   ;;  %s4083_s20 = smov (!%p272_p9), 48  }
  0x12   : > { %2988 = vmatprep.subr.bf16.mxu1 (!%p272_p9), %v2987_v23  ;;  %vm3606_vm10 = vmpackc.low (!%p272_p9), %vm545_vm9, %vm545_vm9  ;;  %vm632_vm14 = vcmask (!%p272_p9), 93184   ;;  %v3433_v48 = vmov (!%p272_p9), -1e+30   ;;  %s4080_s22 = smov (!%p272_p9), 16   ;;  %s4092_s24 = smov (!%p272_p9), 112   ;;  %vm3438_vm15 = vmmov (!%p272_p9), 0  }
  0x13   : > { %v2564_v3 = vadd.s32 (!%p272_p9), 4294967295, %v3536_v1  ;;  %v319_v4 = vadd.s32 (!%p272_p9), 8, %v3536_v1  ;;  %vm349_vm6 = vcmp.ge.s32.totalorder (!%p272_p9), %v3538_v2, 16  ;;  %2990 = vmatpush3.bf16.msra.mxu1 (!%p272_p9), %v2987_v23  ;;  %vm324_vm11 = vcmp.le.s32.totalorder (!%p272_p9), %v3538_v2, %v3536_v1  ;;  %s4095_s13 = smov (!%p272_p9), 16  }
  0x14   : > { %2992 = vmatprep.subr.bf16.mxu1 (!%p272_p9), %v2991_v25  ;;  %vm326_vm12 = vcmp.lt.s32.totalorder (!%p272_p9), %v3538_v2, 8 }
  0x15   : > { %vm337_vm4 = vcmp.eq.s32.totalorder (!%p272_p9), %v3538_v2, %v2564_v3  ;;  %vm342_vm5 = vcmp.eq.s32.totalorder (!%p272_p9), %v3538_v2, %v319_v4  ;;  %vm327_vm13 = vmand (!%p272_p9), %vm324_vm11, %vm326_vm12  ;;  %v2624_v2 = vld [vmem:[%s4074_s3 + $0x40] sm:$0xff] (!%p272_p9) }
  0x16   : > { %v3558_v10 = vsel (!%p272_p9), %vm337_vm4, 1.0, %v3429_v9  ;;  %v3568_v11 = vsel (!%p272_p9), %vm342_vm5, 1.0, %v3429_v9  ;;  %v3626_v49 = vsel (!%p272_p9), %vm327_vm13, 0.0, %v3433_v48  ;;  %v954_v48 = vld [vmem:[%s4073_s2 + $0x18] sm:$0xff] (!%p272_p9) }
  0x17   : > { %s311_s17 = scalar_select %p310_p10, %s3507_s9, 1  ;;  %2776 = vmatprep.mubr.msk.f32.mxu0 %vm350_vm1, %v3558_v10  ;;  %2994 = vmatpush3.bf16.msra.mxu1 %v2991_v25 }
  0x19   : > { %s2658_s18 = sshll.u32 %s311_s17, 4  ;;  %s4084_s17 = smov 112  }
  0x1a   : > { %s314_s21 = scalar_lea.vmem %s4071_s0, %s2658_s18  ;;  %s3431_s18 = smov 96  }
  0x1b   : > { %v3545_v5 = vld [vmem:[%s314_s21] sm:$0xff]  ;;  %v3547_v6 = vld [vmem:[%s314_s21 + $0x8] sm:$0xf]  ;;  %s4082_s21 = smov 64  }
  0x1c   : > { %v2981_v8 = vpack.c.bf16 %v3547_v6, %v3545_v5 }
  0x1e   : > { %2983 = vmatprep.subr.msk.bf16.mxu0 %vm3550_vm3, %v2981_v8 }
  0x1f   : > { %2986 = vmatpush3.bf16.msk.msra.mxu0 %vm3550_vm3, %v2981_v8 }
  0x22   : > { %2777 = vmatmul.mubr.msk.f32.vlgmr.msra.gmra.mrb[0].mxu0 %vm350_vm1, %v3568_v11 }
  0xf5   : > { %v2778_v12 = vpop.f32.mrb[0].mxu0 }
  0xf6   : > { %v427_v13 = vpop.f32.mrb[1].mxu0  ;;  %v437_v14 = vsel %vm349_vm6, %v2778_v12, %v3547_v6 }
  0xf7   : > { %v436_v15 = vsel %vm349_vm6, %v427_v13, %v3545_v5  ;;  %v439_v18 = vmul.f32 %v437_v14, %v437_v14 }
  0xf8   : > { %v438_v16 = vmul.f32 %v436_v15, %v436_v15 }
  0xf9   : > { %v445_v19 = vsel %vm444_vm8, %v439_v18, 0.0 }
  0xfa   : > { %v441_v17 = vsel %vm440_vm7, %v438_v16, 0.0 }
  0xfb   : > { %442 = vadd.xlane.f32.xlu0 %v441_v17 }
  0xff   : > { %446 = vadd.xlane.f32.xlu0 %v445_v19 }
 0x188   : > { %v443_v26 = vpop.xlane.xlu0 %442 }
 0x189   : > { %v448_v27 = vmax.f32 %v443_v26, 1e-24 }
 0x18b   : > { %3266 = vrsqrt.f32 %v448_v27 }
 0x18c   : > { %v447_v28 = vpop.xlane.xlu0 %446 }
 0x18d   : > { %v449_v29 = vmax.f32 %v447_v28, 1e-24 }
 0x18f   : > { %3268 = vrsqrt.f32 %v449_v29 }
 0x195   : > { %v3267_v30 = vpop.eup %3266 }
 0x196   : > { %v452_v31 = vmul.f32 %v3267_v30, %v436_v15 }
 0x198   : > { %2787 = vmatprep.mubr.msk.f32.mxu1 %vm440_vm7, %v452_v31 }
 0x199   : > { %v3269_v32 = vpop.eup %3268 }
 0x19a   : > { %v453_v33 = vmul.f32 %v3269_v32, %v437_v14 }
 0x19c   : > { %2788 = vmatmul.mubr.msk.f32.vlgmr.msra.gmra.mrb[0].mxu1 %vm440_vm7, %v453_v33 }
 0x26f   : > { %v2789_v34 = vpop.f32.mrb[0].mxu1 }
 0x270   : > { %v530_v35 = vpop.f32.mrb[1].mxu1 }
 0x271   : > { %740 = vrot.lane.b32.xlu0 %v530_v35, %s4084_s17  ;;  %2794 = vmatprep.mubr.msk.f32.mxu0 %vm545_vm9, %v530_v35  ;;  %v3597_v36 = vpack.i.bf16 %v2789_v34, %v530_v35 }
 0x273   : > { %3227 = vrot.lane.b32.xlu1 %v3597_v36, %s3431_s18 }
 0x277   : > { %3232 = vrot.lane.b32.xlu1 %v3597_v36, %s3432_s19 }
 0x27b   : > { %742 = vrot.lane.b32.xlu1 %v2789_v34, %s4084_s17  ;;  %s2655_s17 = sshll.u32 %s3507_s9, 6 }
 0x27c   : > { %s4000_s23 = scalar_lea.hbm %s4079_s8, %s2655_s17 }
 0x2e3   : > { %v741_v46 = vpop.permute.xlu0 %740 }
 0x2e5   : > { %v3228_v37 = vpop.permute.xlu1 %3227 }
 0x2e6   : > { %v3230_v38 = vunpack.i.h.bf16 %v3228_v37  ;;  %v3229_v39 = vunpack.i.l.bf16 %v3228_v37 }
 0x2e8   : > { %v2995_v41 = vpack.c.bf16 %v3230_v38, %v3229_v39 }
 0x2e9   : > { %v3233_v42 = vpop.permute.xlu1 %3232 }
 0x2ea   : > { %v3235_v43 = vunpack.i.h.bf16 %v3233_v42  ;;  %v3234_v44 = vunpack.i.l.bf16 %v3233_v42  ;;  %2997 = vmatprep.subr.msk.bf16.mxu0 %vm3606_vm10, %v2995_v41 }
 0x2eb   : > { %3000 = vmatpush3.bf16.xpose.msk.msra.mxu0 %vm3606_vm10, %v2995_v41 }
 0x2ec   : > { %v3007_v45 = vpack.c.bf16 %v3235_v43, %v3234_v44  ;;  %v951_v44 = vld [vmem:[%s4073_s2] sm:$0xff] }
 0x2ed   : > { %v743_v47 = vpop.permute.xlu1 %742 }
 0x2ee   : > { %3009 = vmatprep.subr.msk.bf16.mxu0 %vm3606_vm10, %v3007_v45 }
 0x2f2   : > { %2795 = vmatmul.mubr.msk.f32.vlgmr.msra.gmra.mrb[2].mxu0 %vm545_vm9, %v2789_v34 }
 0x2f3   : > { %3012 = vmatpush3.bf16.xpose.msk.msra.mxu0 %vm3606_vm10, %v3007_v45  ;;  %2808 = vmatprep.mubr.msk.f32.mxu0 %vm545_vm9, %v741_v46  ;;  %v952_v45 = vld [vmem:[%s4073_s2 + $0x8] sm:$0xff]  ;;  %v953_v46 = vld [vmem:[%s4073_s2 + $0x10] sm:$0xff] }
 0x2fa   : > { %2809 = vmatmul.mubr.msk.f32.vlgmr.msra.gmra.mrb[4].mxu0 %vm545_vm9, %v743_v47  ;;  %v3019_v47 = vpack.c.bf16 %v952_v45, %v951_v44 }
 0x2fb   : > { %2833 = vmatprep.mubr.msk.f32.mxu0 %vm350_vm1, %v3558_v10 }
 0x3c5   : > { %v2796_v50 = vpop.f32.mrb[2].mxu0 }
 0x3c6   : > { %v620_v51 = vpop.f32.mrb[3].mxu0  ;;  %v633_v52 = vsel %vm632_vm14, %v2796_v50, -inf }
 0x3c7   : > { %v621_v53 = vadd.f32 %v620_v51, %v3626_v49  ;;  %634 = vmax.xlane.f32.xlu0 %v633_v52 }
 0x3c9   : > { %v629_v54 = vsel %vm350_vm1, %v621_v53, -inf }
 0x3ca   : > { %630 = vmax.xlane.f32.xlu1 %v629_v54 }
 0x3cd   : > { %v2810_v55 = vpop.f32.mrb[4].mxu0 }
 0x3ce   : > { %v822_v56 = vpop.f32.mrb[5].mxu0  ;;  %v834_v59 = vsel %vm632_vm14, %v2810_v55, -inf }
 0x3cf   : > { %v823_v57 = vadd.f32 %v822_v56, %v3626_v49 }
 0x3d1   : > { %v831_v58 = vsel %vm350_vm1, %v823_v57, -inf }
 0x3d2   : > { %832 = vmax.xlane.f32.xlu1 %v831_v58 }
 0x3d6   : > { %835 = vmax.xlane.f32.xlu1 %v834_v59 }
 0x454   : > { %v635_v60 = vpop.xlane.xlu0 %634 }
 0x455   : > { %v637_v61 = vsub.f32 %v2796_v50, %v635_v60  ;;  %v3023_v50 = vpack.c.bf16 %v954_v48, %v953_v46 }
 0x457   : > { %v640_v62 = vmul.f32 1.442695, %v637_v61  ;;  %v631_v63 = vpop.xlane.xlu1 %630 }
 0x458   : > { %v636_v0 = vsub.f32 %v621_v53, %v631_v63 }
 0x459   : > { %3270 = vpow2.f32 %v640_v62 }
 0x45a   : > { %v638_v1 = vmul.f32 1.442695, %v636_v0 }
 0x45c   : > { %3272 = vpow2.f32 %v638_v1 }
 0x45f   : > { %v833_v3 = vpop.xlane.xlu1 %832 }
 0x460   : > { %v837_v4 = vsub.f32 %v823_v57, %v833_v3 }
 0x462   : > { %v839_v8 = vmul.f32 1.442695, %v837_v4 }
 0x463   : > { %v3271_v12 = vpop.eup %3270  ;;  %v836_v13 = vpop.xlane.xlu1 %835 }
 0x464   : > { %3274 = vpow2.f32 %v839_v8  ;;  %v838_v14 = vsub.f32 %v2810_v55, %v836_v13  ;;  %v645_v15 = vsel %vm632_vm14, %v3271_v12, 0.0  ;;  %v1133_v13 = vld [vmem:[%s4074_s3 + $0x8] sm:$0xff] }
 0x465   : > { %646 = vadd.xlane.f32.xlu1 %v645_v15  ;;  %v1132_v15 = vld [vmem:[%s4074_s3] sm:$0xff] }
 0x466   : > { %v3273_v16 = vpop.eup %3272  ;;  %v841_v17 = vmul.f32 1.442695, %v838_v14  ;;  %v1135_v14 = vld [vmem:[%s4074_s3 + $0x18] sm:$0xff] }
 0x467   : > { %v642_v18 = vsel %vm350_vm1, %v3273_v16, 0.0 }
 0x468   : > { %3276 = vpow2.f32 %v841_v17  ;;  %v1134_v17 = vld [vmem:[%s4074_s3 + $0x10] sm:$0xff] }
 0x469   : > { %643 = vadd.xlane.f32.xlu1 %v642_v18  ;;  %v1137_v18 = vld [vmem:[%s4074_s3 + $0x28] sm:$0xff] }
 0x46e   : > { %v3275_v19 = vpop.eup %3274 }
 0x46f   : > { %v843_v20 = vsel %vm350_vm1, %v3275_v19, 0.0 }
 0x470   : > { %844 = vadd.xlane.f32.xlu0 %v843_v20  ;;  %v3035_v20 = vpack.c.bf16 %v1134_v17, %v1132_v15  ;;  %v1263_v15 = vld [vmem:[%s4075_s4 + $0x38] sm:$0xff]  ;;  %v1264_v17 = vld [vmem:[%s4075_s4 + $0x40] sm:$0xff] }
 0x472   : > { %v3277_v21 = vpop.eup %3276 }
 0x473   : > { %v846_v22 = vsel %vm632_vm14, %v3277_v21, 0.0 }
 0x474   : > { %847 = vadd.xlane.f32.xlu1 %v846_v22  ;;  %v1136_v22 = vld [vmem:[%s4074_s3 + $0x20] sm:$0xff] }
 0x485   : > { %3242 = vrot.lane.b32.xlu1 %v3597_v36, %s4083_s20 }
 0x486   : > { %3237 = vrot.lane.b32.xlu0 %v3597_v36, %s4082_s21  ;;  %s3975_s21 = sand.u32 1, %s3418_s28  }
 0x4f2   : > { %v647_v23 = vpop.xlane.xlu1 %646 }
 0x4f6   : > { %v644_v24 = vpop.xlane.xlu1 %643 }
 0x4f7   : > { %3278 = vrcp.f32 %v644_v24 }
 0x4f8   : > { %3280 = vrcp.f32 %v647_v23  ;;  %v1138_v23 = vld [vmem:[%s4074_s3 + $0x30] sm:$0xff] }
 0x4f9   : > { %v3039_v24 = vpack.c.bf16 %v1138_v23, %v1136_v22  ;;  %v1268_v23 = vld [vmem:[%s4075_s4 + $0x60] sm:$0xff] }
 0x4fd   : > { %v845_v25 = vpop.xlane.xlu0 %844 }
 0x4fe   : > { %3282 = vrcp.f32 %v845_v25 }
 0x501   : > { %v3279_v26 = vpop.eup %3278  ;;  %v3238_v27 = vpop.permute.xlu0 %3237 }
 0x502   : > { %v848_v28 = vpop.xlane.xlu1 %847  ;;  %v3240_v29 = vunpack.i.h.bf16 %v3238_v27  ;;  %v3239_v30 = vunpack.i.l.bf16 %v3238_v27  ;;  %v650_v31 = vmul.f32 %v3279_v26, %v3273_v16  ;;  %v3281_v33 = vpop.eup %3280  ;;  %v3033_v16 = vpack.c.bf16 %v1135_v14, %v1133_v13  ;;  %v1262_v14 = vld [vmem:[%s4075_s4 + $0x30] sm:$0xff] }
 0x503   : > { %3284 = vrcp.f32 %v848_v28  ;;  %v651_v38 = vmul.f32 %v3281_v33, %v3271_v12  ;;  %v1256_v33 = vld [vmem:[%s4075_s4] sm:$0xff] }
 0x504   : > { %v3001_v32 = vpack.c.bf16 %v3240_v29, %v3239_v30  ;;  %2801 = vmatprep.mubr.msk.f32.mxu1 %vm350_vm1, %v650_v31 }
 0x506   : > { %v3243_v34 = vpop.permute.xlu1 %3242  ;;  %3003 = vmatprep.subr.msk.bf16.mxu1 %vm3550_vm3, %v3001_v32 }
 0x507   : > { %v3245_v35 = vunpack.i.h.bf16 %v3243_v34  ;;  %v3244_v36 = vunpack.i.l.bf16 %v3243_v34  ;;  %3006 = vmatpush3.bf16.msk.msra.mxu1 %vm3550_vm3, %v3001_v32  ;;  %v1257_v34 = vld [vmem:[%s4075_s4 + $0x8] sm:$0xff] }
 0x508   : > { %v3283_v37 = vpop.eup %3282 }
 0x509   : > { %v3013_v39 = vpack.c.bf16 %v3245_v35, %v3244_v36  ;;  %v851_v41 = vmul.f32 %v3283_v37, %v3275_v19  ;;  %v1139_v19 = vld [vmem:[%s4074_s3 + $0x38] sm:$0xff]  ;;  %v1258_v35 = vld [vmem:[%s4075_s4 + $0x10] sm:$0xff]  ;;  %v3041_v36 = vpack.c.bf16 %v1257_v34, %v1256_v33 }
 0x50a   : > { %2802 = vmatmul.mubr.msk.f32.vlgmr.msra.gmra.mrb[2].mxu1 %vm350_vm1, %v651_v38  ;;  %v1259_v37 = vld [vmem:[%s4075_s4 + $0x18] sm:$0xff] }
 0x50b   : > { %3015 = vmatprep.subr.msk.bf16.mxu1 %vm3550_vm3, %v3013_v39  ;;  %2815 = vmatprep.mubr.msk.f32.mxu1 %vm350_vm1, %v851_v41  ;;  %v3045_v38 = vpack.c.bf16 %v1259_v37, %v1258_v35  ;;  %v1261_v41 = vld [vmem:[%s4075_s4 + $0x28] sm:$0xff] }
 0x50c   : > { %3018 = vmatpush3.bf16.msk.msra.mxu1 %vm3550_vm3, %v3013_v39  ;;  %v1260_v39 = vld [vmem:[%s4075_s4 + $0x20] sm:$0xff] }
 0x50d   : > { %v3285_v42 = vpop.eup %3284  ;;  %3020 = vmatprep.subr.bf16.mxu1 %v3019_v47 }
 0x50e   : > { %v852_v43 = vmul.f32 %v3285_v42, %v3277_v21  ;;  %v3037_v21 = vpack.c.bf16 %v1139_v19, %v1137_v18  ;;  %v3049_v42 = vpack.c.bf16 %v1261_v41, %v1260_v39  ;;  %v1265_v18 = vld [vmem:[%s4075_s4 + $0x48] sm:$0xff] }
 0x50f   : > { %v3057_v19 = vpack.c.bf16 %v1265_v18, %v1264_v17 }
 0x510   : > { %2816 = vmatmul.mubr.msk.f32.vlgmr.msra.gmra.mrb[4].mxu1 %vm350_vm1, %v852_v43 }
 0x511   : > { %3022 = vmatpush3.bf16.msra.mxu1 %v3019_v47 }
 0x512   : > { %3024 = vmatprep.subr.bf16.mxu1 %v3023_v50 }
 0x515   : > { %3026 = vmatpush3.bf16.msra.mxu1 %v3023_v50 }
 0x516   : > { %3034 = vmatprep.subr.bf16.mxu1 %v3033_v16  ;;  %v3053_v16 = vpack.c.bf16 %v1263_v15, %v1262_v14 }
 0x5dd   : > { %v2803_v51 = vpop.f32.mrb[2].mxu1 }
 0x5de   : > { %v731_v52 = vpop.f32.mrb[3].mxu1 }
 0x5e3   : > { %v2817_v53 = vpop.f32.mrb[4].mxu1 }
 0x5e4   : > { %945 = vrot.lane.b32.xlu0 %v2817_v53, %s4080_s22  ;;  %v932_v54 = vpop.f32.mrb[5].mxu1 }
 0x5e5   : > { %943 = vrot.lane.b32.xlu1 %v932_v54, %s4080_s22  ;;  %s2561_s22 = sshll.u32 %s3975_s21, 2 }
 0x5e6   : > { %s309_s12 = scalar_lea.vmem [#allocation4], %s2561_s22 }
 0x5e7   : > { %s2465_s20 = sshll.u32 %s309_s12, 4  ;;  %s2466_s20 = int_to_ptr.vmem [resolvable:$true] %s2465_s20 }
 0x656   : > { %v946_v55 = vpop.permute.xlu0 %945 }
 0x657   : > { %v944_v56 = vpop.permute.xlu1 %943  ;;  %v950_v58 = vsel %vm545_vm9, %v2803_v51, %v946_v55 }
 0x658   : > { %v949_v57 = vsel %vm545_vm9, %v731_v52, %v944_v56 }
 0x659   : > { %2826 = vmatprep.mubr.msk.f32.mxu1 %vm440_vm7, %v949_v57 }
 0x65a   : > { %2827 = vmatmul.mubr.msk.f32.vlgmr.msra.gmra.mrb[6].mxu1 %vm440_vm7, %v950_v58 }
 0x65b   : > { %1210 = vmatprep.mubr.f32.mxu1 %v3429_v9  ;;  %3036 = vmatpush1.bf16.msra.mxu1 %v3035_v20  ;;  %v1266_v20 = vld [vmem:[%s4075_s4 + $0x50] sm:$0xff] }
 0x65c   : > { %3038 = vmatprep.subr.bf16.mxu1 %v3037_v21  ;;  %v1267_v21 = vld [vmem:[%s4075_s4 + $0x58] sm:$0xff] }
 0x65d   : > { %v3061_v22 = vpack.c.bf16 %v1267_v21, %v1266_v20 }
 0x65f   : > { %3040 = vmatpush1.bf16.msra.mxu1 %v3039_v24  ;;  %v1269_v24 = vld [vmem:[%s4075_s4 + $0x68] sm:$0xff] }
 0x660   : > { %3042 = vmatprep.subr.bf16.mxu1 %v3041_v36 }
 0x72d   : > { %v2828_v59 = vpop.f32.mrb[6].mxu1 }
 0x72e   : > { %v3674_v60 = vadd.f32 %v2828_v59, %v3547_v6  ;;  %v1027_v61 = vpop.f32.mrb[7].mxu1 }
 0x72f   : > { %v3677_v62 = vadd.f32 %v1027_v61, %v3545_v5 }
 0x731   : > { %v3027_v63 = vpack.c.bf16 %v3674_v60, %v3677_v62 }
 0x733   : > { %3029 = vmatprep.subr.msk.bf16.mxu0 %vm3550_vm3, %v3027_v63 }
 0x734   : > { %3032 = vmatpush3.bf16.msk.msra.mxu0 %vm3550_vm3, %v3027_v63 }
 0x737   : > { %2834 = vmatmul.mubr.msk.f32.vlgmr.msra.gmra.mrb[6].mxu0 %vm350_vm1, %v3568_v11 }
 0x738   : > { %2875 = vmatprep.mubr.msk.f32.mxu0 %vm350_vm1, %v3558_v10 }
 0x80a   : > { %v2835_v6 = vpop.f32.mrb[6].mxu0 }
 0x80b   : > { %v1117_v5 = vsel %vm349_vm6, %v2835_v6, %v3674_v60  ;;  %v1107_v0 = vpop.f32.mrb[7].mxu0 }
 0x80c   : > { %v1116_v1 = vsel %vm349_vm6, %v1107_v0, %v3677_v62  ;;  %v1119_v3 = vmul.f32 %v1117_v5, %v1117_v5 }
 0x80d   : > { %v1118_v4 = vmul.f32 %v1116_v1, %v1116_v1 }
 0x80e   : > { %v1123_v8 = vsel %vm444_vm8, %v1119_v3, 0.0 }
 0x80f   : > { %1124 = vadd.xlane.f32.xlu0 %v1123_v8  ;;  %v1120_v12 = vsel %vm440_vm7, %v1118_v4, 0.0 }
 0x810   : > { %1121 = vadd.xlane.f32.xlu1 %v1120_v12 }
 0x89c   : > { %v1125_v25 = vpop.xlane.xlu0 %1124 }
 0x89d   : > { %v1122_v26 = vpop.xlane.xlu1 %1121  ;;  %v1127_v27 = vmax.f32 %v1125_v25, 1e-24  ;;  %v3065_v25 = vpack.c.bf16 %v1269_v24, %v1268_v23 }
 0x89e   : > { %v1126_v28 = vmax.f32 %v1122_v26, 1e-24  ;;  %v1270_v26 = vld [vmem:[%s4075_s4 + $0x70] sm:$0xff] }
 0x8a0   : > { %3286 = vrsqrt.f32 %v1126_v28 }
 0x8a1   : > { %3288 = vrsqrt.f32 %v1127_v27  ;;  %v1271_v27 = vld [vmem:[%s4075_s4 + $0x78] sm:$0xff] }
 0x8a2   : > { %v3069_v28 = vpack.c.bf16 %v1271_v27, %v1270_v26 }
 0x8aa   : > { %v3287_v29 = vpop.eup %3286 }
 0x8ab   : > { %v1130_v30 = vmul.f32 %v3287_v29, %v1116_v1  ;;  %v3289_v31 = vpop.eup %3288 }
 0x8ac   : > { %v1131_v32 = vmul.f32 %v3289_v31, %v1117_v5 }
 0x8ad   : > { %2590 = vmatmul.mubr.msk.f32.vlgmr.msra.gmra.mrb[8].mxu1 %vm440_vm7, %v1130_v30 }
 0x8ae   : > { %1216 = vmatprep.mubr.f32.mxu1 %v3429_v9  ;;  %3044 = vmatpush3.bf16.msra.mxu1 %v3041_v36 }
 0x8af   : > { %3046 = vmatprep.subr.bf16.mxu1 %v3045_v38 }
 0x8b1   : > { %2591 = vmatmul.mubr.msk.f32.gmra.mrb[10].mxu1 %vm440_vm7, %v1131_v32 }
 0x8b2   : > { %3048 = vmatpush3.bf16.msra.mxu1 %v3045_v38 }
 0x8b3   : > { %3050 = vmatprep.subr.bf16.mxu1 %v3049_v42 }
 0x8b6   : > { %3052 = vmatpush3.bf16.msra.mxu1 %v3049_v42 }
 0x8b7   : > { %3054 = vmatprep.subr.bf16.mxu1 %v3053_v16 }
 0x8ba   : > { %3056 = vmatpush3.bf16.msra.mxu1 %v3053_v16 }
 0x8bb   : > { %3058 = vmatprep.subr.bf16.mxu1 %v3057_v19 }
 0x8be   : > { %3060 = vmatpush3.bf16.msra.mxu1 %v3057_v19 }
 0x8bf   : > { %3062 = vmatprep.subr.bf16.mxu1 %v3061_v22 }
 0x8c2   : > { %3064 = vmatpush3.bf16.msra.mxu1 %v3061_v22 }
 0x8c3   : > { %3066 = vmatprep.subr.bf16.mxu1 %v3065_v25 }
 0x8c6   : > { %3068 = vmatpush3.bf16.msra.mxu1 %v3065_v25 }
 0x8c7   : > { %3070 = vmatprep.subr.bf16.mxu1 %v3069_v28 }
 0x8ca   : > { %3072 = vmatpush3.bf16.msra.mxu1 %v3069_v28 }
 0x980   : > { %v1212_v43 = vpop.f32.mrb[8].mxu1 }
 0x981   : > { %v1214_v44 = vpop.f32.mrb[9].mxu1 }
 0x982   : > { %v1225_v45 = vmul.f32 0.044715, %v1214_v44  ;;  %v1223_v59 = vmul.f32 0.5, %v1214_v44 }
 0x984   : > { %v1227_v46 = vmul.f32 %v1225_v45, %v1214_v44  ;;  %v1218_v47 = vpop.f32.mrb[10].mxu1 }
 0x985   : > { %v1220_v48 = vpop.f32.mrb[11].mxu1 }
 0x986   : > { %v1229_v50 = vmul.f32 %v1227_v46, %v1214_v44  ;;  %v1226_v51 = vmul.f32 0.044715, %v1220_v48  ;;  %v1224_v0 = vmul.f32 0.5, %v1220_v48 }
 0x988   : > { %v1231_v52 = vadd.f32 %v1229_v50, %v1214_v44  ;;  %v1228_v53 = vmul.f32 %v1226_v51, %v1220_v48  ;;  %v2595_v50 = vld [vmem:[%s4072_s1 + $0x20] sm:$0xff]  ;;  %v2596_v51 = vld [vmem:[%s4072_s1 + $0x28] sm:$0xff] }
 0x98a   : > { %v1233_v54 = vmul.f32 0.7978846, %v1231_v52  ;;  %v1230_v55 = vmul.f32 %v1228_v53, %v1220_v48  ;;  %v2597_v52 = vld [vmem:[%s4072_s1 + $0x30] sm:$0xff]  ;;  %v3079_v53 = vpack.c.bf16 %v2596_v51, %v2595_v50 }
 0x98c   : > { %3290 = vtanh.f32 %v1233_v54  ;;  %v1232_v56 = vadd.f32 %v1230_v55, %v1220_v48  ;;  %v2598_v54 = vld [vmem:[%s4072_s1 + $0x38] sm:$0xff] }
 0x98d   : > { %v3083_v55 = vpack.c.bf16 %v2598_v54, %v2597_v52 }
 0x98e   : > { %v1234_v57 = vmul.f32 0.7978846, %v1232_v56 }
 0x990   : > { %3292 = vtanh.f32 %v1234_v57 }
 0x996   : > { %v3291_v58 = vpop.eup %3290 }
 0x997   : > { %v1237_v61 = vadd.f32 1.0, %v3291_v58 }
 0x999   : > { %v1239_v63 = vmul.f32 %v1237_v61, %v1223_v59 }
 0x99a   : > { %v3293_v6 = vpop.eup %3292 }
 0x99b   : > { %v1241_v5 = vmul.f32 %v1239_v63, %v1212_v43  ;;  %v1238_v1 = vadd.f32 1.0, %v3293_v6 }
 0x99d   : > { %v1243_v3 = vmul.f32 %v1241_v5, %v1241_v5  ;;  %v1240_v4 = vmul.f32 %v1238_v1, %v1224_v0 }
 0x99f   : > { %1245 = vadd.xlane.f32.xlu0 %v1243_v3  ;;  %v1242_v8 = vmul.f32 %v1240_v4, %v1218_v47 }
 0x9a1   : > { %v1244_v12 = vmul.f32 %v1242_v8, %v1242_v8 }
 0x9a3   : > { %v1247_v13 = vsel %vm357_vm0, %v1244_v12, 0.0 }
 0x9a4   : > { %1248 = vadd.xlane.f32.xlu1 %v1247_v13 }
 0xa2c   : > { %v1246_v29 = vpop.xlane.xlu0 %1245 }
 0xa2d   : > { %v1250_v30 = vmax.f32 %v1246_v29, 1e-24 }
 0xa2f   : > { %3294 = vrsqrt.f32 %v1250_v30 }
 0xa31   : > { %v1249_v31 = vpop.xlane.xlu1 %1248 }
 0xa32   : > { %v1251_v32 = vmax.f32 %v1249_v31, 1e-24 }
 0xa34   : > { %3296 = vrsqrt.f32 %v1251_v32 }
 0xa39   : > { %v3295_v33 = vpop.eup %3294 }
 0xa3a   : > { %v1254_v34 = vmul.f32 %v3295_v33, %v1241_v5 }
 0xa3c   : > { %2868 = vmatprep.mubr.f32.mxu1 %v1254_v34 }
 0xa3e   : > { %v3297_v35 = vpop.eup %3296 }
 0xa3f   : > { %v1255_v36 = vmul.f32 %v3297_v35, %v1242_v8 }
 0xa41   : > { %2869 = vmatmul.mubr.f32.vlgmr.msra.gmra.mrb[12].mxu1 %v1255_v36 }
 0xb14   : > { %v2870_v37 = vpop.f32.mrb[12].mxu1 }
 0xb15   : > { %v3774_v38 = vadd.f32 %v2870_v37, %v3674_v60  ;;  %v1338_v39 = vpop.f32.mrb[13].mxu1 }
 0xb16   : > { %v3777_v41 = vadd.f32 %v1338_v39, %v3677_v62 }
 0xb18   : > { %v3073_v42 = vpack.c.bf16 %v3774_v38, %v3777_v41 }
 0xb1a   : > { %3075 = vmatprep.subr.msk.bf16.mxu0 %vm3550_vm3, %v3073_v42 }
 0xb1b   : > { %3078 = vmatpush3.bf16.msk.msra.mxu0 %vm3550_vm3, %v3073_v42 }
 0xb1c   : > { %3080 = vmatprep.subr.bf16.mxu0 %v3079_v53 }
 0xb1e   : > { %2876 = vmatmul.mubr.msk.f32.vlgmr.msra.gmra.mrb[8].mxu0 %vm350_vm1, %v3568_v11 }
 0xb1f   : > { %3082 = vmatpush3.bf16.msra.mxu0 %v3079_v53 }
 0xb20   : > { %3084 = vmatprep.subr.bf16.mxu0 %v3083_v55 }
 0xb23   : > { %3086 = vmatpush3.bf16.msra.mxu0 %v3083_v55 }
 0xbf1   : > { %v2877_v43 = vpop.f32.mrb[8].mxu0 }
 0xbf2   : > { %v1428_v60 = vsel %vm349_vm6, %v2877_v43, %v3774_v38  ;;  %v1418_v44 = vpop.f32.mrb[9].mxu0 }
 0xbf3   : > { %v1427_v62 = vsel %vm349_vm6, %v1418_v44, %v3777_v41  ;;  %v1430_v45 = vmul.f32 %v1428_v60, %v1428_v60 }
 0xbf4   : > { %v1429_v46 = vmul.f32 %v1427_v62, %v1427_v62 }
 0xbf5   : > { %v1434_v47 = vsel %vm444_vm8, %v1430_v45, 0.0 }
 0xbf6   : > { %1435 = vadd.xlane.f32.xlu1 %v1434_v47  ;;  %v1431_v48 = vsel %vm440_vm7, %v1429_v46, 0.0 }
 0xbf7   : > { %1432 = vadd.xlane.f32.xlu0 %v1431_v48 }
 0xc83   : > { %v1436_v56 = vpop.xlane.xlu1 %1435 }
 0xc84   : > { %v1438_v57 = vmax.f32 %v1436_v56, 1e-24  ;;  %v1433_v58 = vpop.xlane.xlu0 %1432 }
 0xc85   : > { %v1437_v59 = vmax.f32 %v1433_v58, 1e-24 }
 0xc86   : > { %3298 = vrsqrt.f32 %v1438_v57 }
 0xc87   : > { %3300 = vrsqrt.f32 %v1437_v59 }
 0xc90   : > { %v3299_v61 = vpop.eup %3298 }
 0xc91   : > { %v3301_v63 = vpop.eup %3300  ;;  %v1442_v5 = vmul.f32 %v3299_v61, %v1428_v60 }
 0xc92   : > { %v1441_v6 = vmul.f32 %v3301_v63, %v1427_v62 }
 0xc94   : > { %2886 = vmatprep.mubr.msk.f32.mxu0 %vm440_vm7, %v1441_v6 }
 0xc95   : > { %2887 = vmatmul.mubr.msk.f32.vlgmr.msra.gmra.mrb[10].mxu0 %vm440_vm7, %v1442_v5 }
 0xd68   : > { %v2888_v0 = vpop.f32.mrb[10].mxu0 }
 0xd69   : > { %v1520_v1 = vpop.f32.mrb[11].mxu0 }
 0xd6a   : > { %2893 = vmatprep.mubr.msk.f32.mxu0 %vm545_vm9, %v1520_v1  ;;  %v3810_v3 = vpack.i.bf16 %v2888_v0, %v1520_v1 }
 0xd6c   : > { %3252 = vrot.lane.b32.xlu1 %v3810_v3, %s3432_s19  ;;  %3247 = vrot.lane.b32.xlu0 %v3810_v3, %s3431_s18  ;;  %s4093_s18 = smov 48   ;;  %s4094_s19 = smov 64  }
 0xd70   : > { %1728 = vrot.lane.b32.xlu1 %v1520_v1, %s4092_s24  ;;  %1730 = vrot.lane.b32.xlu0 %v2888_v0, %s4092_s24  ;;  %s2439_s24 = scalar_lea.sflag [#allocation5], %s3975_s21 }
 0xdde   : > { %v3253_v4 = vpop.permute.xlu1 %3252  ;;  %v3248_v8 = vpop.permute.xlu0 %3247 }
 0xddf   : > { %v3255_v12 = vunpack.i.h.bf16 %v3253_v4  ;;  %v3254_v13 = vunpack.i.l.bf16 %v3253_v4  ;;  %v3250_v14 = vunpack.i.h.bf16 %v3248_v8  ;;  %v3249_v15 = vunpack.i.l.bf16 %v3248_v8 }
 0xde1   : > { %v3099_v16 = vpack.c.bf16 %v3255_v12, %v3254_v13  ;;  %v3087_v17 = vpack.c.bf16 %v3250_v14, %v3249_v15  ;;  %v2615_v12 = vld [vmem:[%s4073_s2 + $0x20] sm:$0xff]  ;;  %v2616_v13 = vld [vmem:[%s4073_s2 + $0x28] sm:$0xff]  ;;  %v2617_v14 = vld [vmem:[%s4073_s2 + $0x30] sm:$0xff] }
 0xde2   : > { %v1729_v18 = vpop.permute.xlu1 %1728  ;;  %v1731_v19 = vpop.permute.xlu0 %1730  ;;  %v3111_v15 = vpack.c.bf16 %v2616_v13, %v2615_v12 }
 0xde3   : > { %3089 = vmatprep.subr.msk.bf16.mxu0 %vm3606_vm10, %v3087_v17  ;;  %3101 = vmatprep.subr.msk.bf16.mxu1 %vm3606_vm10, %v3099_v16 }
 0xde4   : > { %2907 = vmatprep.mubr.msk.f32.mxu1 %vm545_vm9, %v1729_v18  ;;  %3092 = vmatpush3.bf16.xpose.msk.msra.mxu0 %vm3606_vm10, %v3087_v17 }
 0xde5   : > { %3104 = vmatpush3.bf16.xpose.msk.msra.mxu1 %vm3606_vm10, %v3099_v16  ;;  %v2618_v16 = vld [vmem:[%s4073_s2 + $0x38] sm:$0xff] }
 0xde6   : > { %v3115_v17 = vpack.c.bf16 %v2618_v16, %v2617_v14 }
 0xdeb   : > { %2894 = vmatmul.mubr.msk.f32.vlgmr.msra.gmra.mrb[12].mxu0 %vm545_vm9, %v2888_v0 }
 0xdec   : > { %2908 = vmatmul.mubr.msk.f32.vlgmr.msra.gmra.mrb[14].mxu1 %vm545_vm9, %v1731_v19 }
 0xded   : > { %2932 = vmatprep.mubr.msk.f32.mxu1 %vm350_vm1, %v3558_v10 }
 0xebe   : > { %v2895_v20 = vpop.f32.mrb[12].mxu0 }
 0xebf   : > { %v2909_v21 = vpop.f32.mrb[14].mxu1  ;;  %v1609_v22 = vpop.f32.mrb[13].mxu0  ;;  %v1621_v23 = vsel %vm632_vm14, %v2895_v20, -inf }
 0xec0   : > { %v1610_v24 = vadd.f32 %v1609_v22, %v3626_v49  ;;  %v1810_v25 = vpop.f32.mrb[15].mxu1  ;;  %1622 = vmax.xlane.f32.xlu0 %v1621_v23  ;;  %v1822_v28 = vsel %vm632_vm14, %v2909_v21, -inf }
 0xec1   : > { %v1811_v40 = vadd.f32 %v1810_v25, %v3626_v49 }
 0xec2   : > { %v1618_v26 = vsel %vm350_vm1, %v1610_v24, -inf }
 0xec3   : > { %1619 = vmax.xlane.f32.xlu1 %v1618_v26  ;;  %v1819_v27 = vsel %vm350_vm1, %v1811_v40, -inf }
 0xec4   : > { %1820 = vmax.xlane.f32.xlu0 %v1819_v27 }
 0xec7   : > { %1823 = vmax.xlane.f32.xlu1 %v1822_v28 }
 0xf4d   : > { %v1623_v10 = vpop.xlane.xlu0 %1622 }
 0xf4e   : > { %v1625_v29 = vsub.f32 %v2895_v20, %v1623_v10 }
 0xf50   : > { %v1628_v30 = vmul.f32 1.442695, %v1625_v29  ;;  %v1620_v31 = vpop.xlane.xlu1 %1619 }
 0xf51   : > { %v1624_v32 = vsub.f32 %v1610_v24, %v1620_v31  ;;  %v1821_v33 = vpop.xlane.xlu0 %1820 }
 0xf52   : > { %3302 = vpow2.f32 %v1628_v30  ;;  %v1825_v34 = vsub.f32 %v1811_v40, %v1821_v33 }
 0xf53   : > { %v1626_v35 = vmul.f32 1.442695, %v1624_v32 }
 0xf54   : > { %v1827_v36 = vmul.f32 1.442695, %v1825_v34  ;;  %v1824_v49 = vpop.xlane.xlu1 %1823  ;;  %v2627_v34 = vld [vmem:[%s4074_s3 + $0x58] sm:$0xff] }
 0xf55   : > { %3304 = vpow2.f32 %v1626_v35  ;;  %v1826_v37 = vsub.f32 %v2909_v21, %v1824_v49  ;;  %v2629_v49 = vld [vmem:[%s4074_s3 + $0x68] sm:$0xff] }
 0xf56   : > { %3306 = vpow2.f32 %v1827_v36  ;;  %v2626_v36 = vld [vmem:[%s4074_s3 + $0x50] sm:$0xff] }
 0xf57   : > { %v1829_v39 = vmul.f32 1.442695, %v1826_v37  ;;  %v2631_v37 = vld [vmem:[%s4074_s3 + $0x78] sm:$0xff] }
 0xf59   : > { %3308 = vpow2.f32 %v1829_v39  ;;  %v3127_v39 = vpack.c.bf16 %v2626_v36, %v2624_v2  ;;  %v2645_v2 = vld [vmem:[%s4075_s4 + $0xd8] sm:$0xff]  ;;  %v2646_v36 = vld [vmem:[%s4075_s4 + $0xe0] sm:$0xff] }
 0xf5c   : > { %v3303_v42 = vpop.eup %3302 }
 0xf5d   : > { %v1633_v43 = vsel %vm632_vm14, %v3303_v42, 0.0 }
 0xf5e   : > { %1634 = vadd.xlane.f32.xlu1 %v1633_v43  ;;  %v2628_v43 = vld [vmem:[%s4074_s3 + $0x60] sm:$0xff] }
 0xf5f   : > { %v3305_v60 = vpop.eup %3304 }
 0xf60   : > { %v1630_v44 = vsel %vm350_vm1, %v3305_v60, 0.0  ;;  %v3307_v62 = vpop.eup %3306 }
 0xf61   : > { %1631 = vadd.xlane.f32.xlu0 %v1630_v44  ;;  %v1831_v46 = vsel %vm350_vm1, %v3307_v62, 0.0 }
 0xf63   : > { %v3309_v45 = vpop.eup %3308 }
 0xf64   : > { %v1834_v47 = vsel %vm632_vm14, %v3309_v45, 0.0 }
 0xf65   : > { %1832 = vadd.xlane.f32.xlu0 %v1831_v46  ;;  %1835 = vadd.xlane.f32.xlu1 %v1834_v47 }
 0xf76   : > { %3262 = vrot.lane.b32.xlu1 %v3810_v3, %s4093_s18  ;;  %s3332_s18 = scalar_lea.vmem %s2466_s20, 64 }
 0xf77   : > { %p3333_p11 = scmp.ne.s32.totalorder %s2466_s20, %s3332_s18 }
 0xf79   : > { %p3334_p12 = pnand %p3333_p11, %p3524_p5 }
 0xf7b   : > { %3257 = vrot.lane.b32.xlu0 %v3810_v3, %s4094_s19  ;;  %p3335_p13 = pneg %p3334_p12  ;;  %s3439_s19 = smov [#allocation4]  }
 0xf7c   : > { %s3336_s25 = sshll.u32 %s3439_s19, 4  ;;  %s3337_s25 = int_to_ptr.vmem [resolvable:$false] %s3336_s25 }
 0xf7d   : > { %s3338_s26 = scalar_lea.vmem %s3337_s25, 128  ;;  %p3339_p0 = scmp.lt.s32.totalorder %s2466_s20, %s3337_s25 }
 0xf7e   : > { %p3340_p1 = scmp.lt.s32.totalorder %s3338_s26, %s3332_s18 }
 0xf80   : > { %p3341_p2 = por %p3340_p1, %p3339_p0 }
 0xf82   : > { %p3342_p3 = pnand %p3341_p2, %p3335_p13 }
 0xfeb   : > { %v1635_v48 = vpop.xlane.xlu1 %1634 }
 0xfee   : > { %v1632_v50 = vpop.xlane.xlu0 %1631 }
 0xfef   : > { %3310 = vrcp.f32 %v1632_v50 }
 0xff0   : > { %3312 = vrcp.f32 %v1635_v48 }
 0xff2   : > { %v1833_v51 = vpop.xlane.xlu0 %1832  ;;  %v1836_v52 = vpop.xlane.xlu1 %1835 }
 0xff3   : > { %3314 = vrcp.f32 %v1833_v51 }
 0xff4   : > { %3316 = vrcp.f32 %v1836_v52 }
 0xff6   : > { %v3258_v53 = vpop.permute.xlu0 %3257  ;;  %v3263_v54 = vpop.permute.xlu1 %3262 }
 0xff7   : > { %v3260_v55 = vunpack.i.h.bf16 %v3258_v53  ;;  %v3259_v56 = vunpack.i.l.bf16 %v3258_v53  ;;  %v3265_v57 = vunpack.i.h.bf16 %v3263_v54  ;;  %v3264_v58 = vunpack.i.l.bf16 %v3263_v54  ;;  %v2634_v53 = vld [vmem:[%s4075_s4 + $0x80] sm:$0xff]  ;;  %v2635_v54 = vld [vmem:[%s4075_s4 + $0x88] sm:$0xff] }
 0xff9   : > { %v3311_v59 = vpop.eup %3310  ;;  %v3093_v61 = vpack.c.bf16 %v3260_v55, %v3259_v56  ;;  %v3105_v5 = vpack.c.bf16 %v3265_v57, %v3264_v58  ;;  %v2636_v55 = vld [vmem:[%s4075_s4 + $0x90] sm:$0xff]  ;;  %v3133_v56 = vpack.c.bf16 %v2635_v54, %v2634_v53  ;;  %v2637_v57 = vld [vmem:[%s4075_s4 + $0x98] sm:$0xff] }
 0xffa   : > { %v3313_v63 = vpop.eup %3312  ;;  %v1638_v6 = vmul.f32 %v3311_v59, %v3305_v60  ;;  %v2630_v60 = vld [vmem:[%s4074_s3 + $0x70] sm:$0xff]  ;;  %v3137_v58 = vpack.c.bf16 %v2637_v57, %v2636_v55  ;;  %v2638_v59 = vld [vmem:[%s4075_s4 + $0xa0] sm:$0xff] }
 0xffb   : > { %3095 = vmatprep.subr.msk.bf16.mxu0 %vm3550_vm3, %v3093_v61  ;;  %v1639_v1 = vmul.f32 %v3313_v63, %v3303_v42  ;;  %v3129_v42 = vpack.c.bf16 %v2631_v37, %v2629_v49  ;;  %v3131_v44 = vpack.c.bf16 %v2630_v60, %v2628_v43  ;;  %v2647_v49 = vld [vmem:[%s4075_s4 + $0xe8] sm:$0xff]  ;;  %v2347_v57 = vld [vmem:[%s4076_s5] sm:$0xff] }
 0xffc   : > { %3098 = vmatpush3.bf16.msk.msra.mxu0 %vm3550_vm3, %v3093_v61  ;;  %2900 = vmatprep.mubr.msk.f32.mxu0 %vm350_vm1, %v1638_v6  ;;  %v2639_v61 = vld [vmem:[%s4075_s4 + $0xa8] sm:$0xff]  ;;  %v3157_v37 = vpack.c.bf16 %v2647_v49, %v2646_v36 }
 0xffd   : > { %v3315_v0 = vpop.eup %3314  ;;  %3107 = vmatprep.subr.msk.bf16.mxu0 %vm3550_vm3, %v3105_v5  ;;  %v3141_v63 = vpack.c.bf16 %v2639_v61, %v2638_v59  ;;  %v2350_v61 = vld [vmem:[%s4076_s5 + $0x18] sm:$0xff] }
 0xffe   : > { %v3317_v3 = vpop.eup %3316  ;;  %v1839_v4 = vmul.f32 %v3315_v0, %v3307_v62 }
 0xfff   : > { %2901 = vmatmul.mubr.msk.f32.vlgmr.msra.gmra.mrb[14].mxu0 %vm350_vm1, %v1639_v1  ;;  %v1840_v8 = vmul.f32 %v3317_v3, %v3309_v45 }
0x1000   : > { %3110 = vmatpush3.bf16.msk.msra.mxu0 %vm3550_vm3, %v3105_v5  ;;  %2914 = vmatprep.mubr.msk.f32.mxu0 %vm350_vm1, %v1839_v4 }
0x1001   : > { %3112 = vmatprep.subr.bf16.mxu0 %v3111_v15 }
0x1003   : > { %2915 = vmatmul.mubr.msk.f32.vlgmr.msra.gmra.mrb[16].mxu0 %vm350_vm1, %v1840_v8 }
0x1004   : > { %3114 = vmatpush3.bf16.msra.mxu0 %v3111_v15 }
0x1005   : > { %3116 = vmatprep.subr.bf16.mxu0 %v3115_v17 }
0x1008   : > { %3118 = vmatpush3.bf16.msra.mxu0 %v3115_v17 }
0x1009   : > { %3134 = vmatprep.subr.bf16.mxu0 %v3133_v56 }
0x10d2   : > { %v2902_v18 = vpop.f32.mrb[14].mxu0 }
0x10d3   : > { %v1719_v19 = vpop.f32.mrb[15].mxu0 }
0x10d6   : > { %v2916_v20 = vpop.f32.mrb[16].mxu0 }
0x10d7   : > { %1933 = vrot.lane.b32.xlu0 %v2916_v20, %s4095_s13  ;;  %v1920_v21 = vpop.f32.mrb[17].mxu0 }
0x10d8   : > { %1931 = vrot.lane.b32.xlu1 %v1920_v21, %s4095_s13 }
0x1149   : > { %v1934_v22 = vpop.permute.xlu0 %1933 }
0x114a   : > { %v1932_v23 = vpop.permute.xlu1 %1931  ;;  %v1938_v25 = vsel %vm545_vm9, %v2902_v18, %v1934_v22 }
0x114b   : > { %v1937_v24 = vsel %vm545_vm9, %v1719_v19, %v1932_v23 }
0x114c   : > { %2925 = vmatprep.mubr.msk.f32.mxu0 %vm440_vm7, %v1937_v24 }
0x114d   : > { %2926 = vmatmul.mubr.msk.f32.vlgmr.msra.gmra.mrb[18].mxu0 %vm440_vm7, %v1938_v25 }
0x114e   : > { %3136 = vmatpush3.bf16.msra.mxu0 %v3133_v56 }
0x114f   : > { %3138 = vmatprep.subr.bf16.mxu0 %v3137_v58 }
0x1152   : > { %3140 = vmatpush3.bf16.msra.mxu0 %v3137_v58  ;;  %v2348_v58 = vld [vmem:[%s4076_s5 + $0x8] sm:$0xff] }
0x1153   : > { %3142 = vmatprep.subr.bf16.mxu0 %v3141_v63  ;;  %v3166_v59 = vpack.c.bf16 %v2348_v58, %v2347_v57 }
0x1156   : > { %3144 = vmatpush3.bf16.msra.mxu0 %v3141_v63 }
0x1220   : > { %v2927_v40 = vpop.f32.mrb[18].mxu0 }
0x1221   : > { %v3876_v26 = vadd.f32 %v2927_v40, %v3774_v38  ;;  %v2016_v27 = vpop.f32.mrb[19].mxu0 }
0x1222   : > { %v3879_v28 = vadd.f32 %v2016_v27, %v3777_v41 }
0x1224   : > { %v3119_v10 = vpack.c.bf16 %v3876_v26, %v3879_v28 }
0x1226   : > { %3121 = vmatprep.subr.msk.bf16.mxu1 %vm3550_vm3, %v3119_v10 }
0x1227   : > { %3124 = vmatpush3.bf16.msk.msra.mxu1 %vm3550_vm3, %v3119_v10 }
0x122a   : > { %2933 = vmatmul.mubr.msk.f32.vlgmr.msra.gmra.mrb[16].mxu1 %vm350_vm1, %v3568_v11  ;;  %v2625_v11 = vld [vmem:[%s4074_s3 + $0x48] sm:$0xff] }
0x122b   : > { %2200 = vmatprep.mubr.f32.mxu1 %v3429_v9  ;;  %v3125_v35 = vpack.c.bf16 %v2627_v34, %v2625_v11  ;;  %v2644_v34 = vld [vmem:[%s4075_s4 + $0xd0] sm:$0xff] }
0x122d   : > { %3126 = vmatprep.subr.bf16.mxu1 %v3125_v35  ;;  %v3153_v35 = vpack.c.bf16 %v2645_v2, %v2644_v34 }
0x122e   : > { %3128 = vmatpush1.bf16.msra.mxu1 %v3127_v39  ;;  %v2648_v39 = vld [vmem:[%s4075_s4 + $0xf0] sm:$0xff] }
0x122f   : > { %3130 = vmatprep.subr.bf16.mxu1 %v3129_v42  ;;  %v2649_v42 = vld [vmem:[%s4075_s4 + $0xf8] sm:$0xff] }
0x1230   : > { %v3161_v43 = vpack.c.bf16 %v2649_v42, %v2648_v39 }
0x1232   : > { %3132 = vmatpush1.bf16.msra.mxu1 %v3131_v44 }
0x12fd   : > { %v2934_v38 = vpop.f32.mrb[16].mxu1 }
0x12fe   : > { %v2106_v41 = vsel %vm349_vm6, %v2934_v38, %v3876_v26  ;;  %v2096_v29 = vpop.f32.mrb[17].mxu1 }
0x12ff   : > { %v2105_v30 = vsel %vm349_vm6, %v2096_v29, %v3879_v28  ;;  %v2108_v31 = vmul.f32 %v2106_v41, %v2106_v41 }
0x1300   : > { %v2107_v32 = vmul.f32 %v2105_v30, %v2105_v30 }
0x1301   : > { %v2112_v7 = vsel %vm444_vm8, %v2108_v31, 0.0  ;;  %v2641_v31 = vld [vmem:[%s4075_s4 + $0xb8] sm:$0xff] }
0x1302   : > { %2113 = vadd.xlane.f32.xlu0 %v2112_v7  ;;  %v2109_v33 = vsel %vm440_vm7, %v2107_v32, 0.0  ;;  %v2642_v7 = vld [vmem:[%s4075_s4 + $0xc0] sm:$0xff] }
0x1303   : > { %2110 = vadd.xlane.f32.xlu1 %v2109_v33  ;;  %v2643_v33 = vld [vmem:[%s4075_s4 + $0xc8] sm:$0xff] }
0x1304   : > { %v3149_v11 = vpack.c.bf16 %v2643_v33, %v2642_v7 }
0x138f   : > { %v2114_v62 = vpop.xlane.xlu0 %2113 }
0x1390   : > { %v2111_v45 = vpop.xlane.xlu1 %2110  ;;  %v2116_v46 = vmax.f32 %v2114_v62, 1e-24 }
0x1391   : > { %v2115_v47 = vmax.f32 %v2111_v45, 1e-24 }
0x1393   : > { %3318 = vrsqrt.f32 %v2115_v47 }
0x1394   : > { %3320 = vrsqrt.f32 %v2116_v46 }
0x139d   : > { %v3319_v48 = vpop.eup %3318 }
0x139e   : > { %v2119_v50 = vmul.f32 %v3319_v48, %v2105_v30  ;;  %v3321_v51 = vpop.eup %3320  ;;  %v2640_v30 = vld [vmem:[%s4075_s4 + $0xb0] sm:$0xff] }
0x139f   : > { %v2120_v52 = vmul.f32 %v3321_v51, %v2106_v41  ;;  %v3145_v32 = vpack.c.bf16 %v2641_v31, %v2640_v30 }
0x13a0   : > { %2632 = vmatmul.mubr.msk.f32.vlgmr.msra.gmra.mrb[18].mxu1 %vm440_vm7, %v2119_v50 }
0x13a1   : > { %2206 = vmatprep.mubr.f32.mxu1 %v3429_v9  ;;  %3146 = vmatprep.subr.bf16.mxu0 %v3145_v32 }
0x13a2   : > { %3148 = vmatpush3.bf16.msra.mxu0 %v3145_v32 }
0x13a3   : > { %3150 = vmatprep.subr.bf16.mxu0 %v3149_v11 }
0x13a4   : > { %2633 = vmatmul.mubr.msk.f32.gmra.mrb[20].mxu1 %vm440_vm7, %v2120_v52 }
0x13a5   : > { %2978 = vmatprep.mubr.msk.f32.mxu1 %vm3438_vm15, %v3429_v9 }
0x13a6   : > { %3152 = vmatpush3.bf16.msra.mxu0 %v3149_v11 }
0x13a7   : > { %3154 = vmatprep.subr.bf16.mxu0 %v3153_v35 }
0x13aa   : > { %3156 = vmatpush3.bf16.msra.mxu0 %v3153_v35 }
0x13ab   : > { %3158 = vmatprep.subr.bf16.mxu0 %v3157_v37 }
0x13ae   : > { %3160 = vmatpush3.bf16.msra.mxu0 %v3157_v37 }
0x13af   : > { %3162 = vmatprep.subr.bf16.mxu0 %v3161_v43 }
0x13b2   : > { %3164 = vmatpush3.bf16.msra.mxu0 %v3161_v43 }
0x1473   : > { %v2202_v6 = vpop.f32.mrb[18].mxu1 }
0x1474   : > { %v2204_v5 = vpop.f32.mrb[19].mxu1 }
0x1475   : > { %v2215_v0 = vmul.f32 0.044715, %v2204_v5  ;;  %v2213_v20 = vmul.f32 0.5, %v2204_v5 }
0x1477   : > { %v2217_v1 = vmul.f32 %v2215_v0, %v2204_v5  ;;  %v2208_v3 = vpop.f32.mrb[20].mxu1 }
0x1478   : > { %v2210_v4 = vpop.f32.mrb[21].mxu1 }
0x1479   : > { %v2219_v8 = vmul.f32 %v2217_v1, %v2204_v5  ;;  %v2216_v12 = vmul.f32 0.044715, %v2210_v4  ;;  %v2214_v25 = vmul.f32 0.5, %v2210_v4 }
0x147b   : > { %v2221_v13 = vadd.f32 %v2219_v8, %v2204_v5  ;;  %v2218_v14 = vmul.f32 %v2216_v12, %v2210_v4 }
0x147d   : > { %v2223_v15 = vmul.f32 0.7978846, %v2221_v13  ;;  %v2220_v16 = vmul.f32 %v2218_v14, %v2210_v4 }
0x147f   : > { %3322 = vtanh.f32 %v2223_v15  ;;  %v2222_v17 = vadd.f32 %v2220_v16, %v2210_v4 }
0x1481   : > { %v2224_v18 = vmul.f32 0.7978846, %v2222_v17 }
0x1483   : > { %3324 = vtanh.f32 %v2224_v18 }
0x1489   : > { %v3323_v19 = vpop.eup %3322 }
0x148a   : > { %v2227_v21 = vadd.f32 1.0, %v3323_v19 }
0x148c   : > { %v2229_v22 = vmul.f32 %v2227_v21, %v2213_v20 }
0x148d   : > { %v3325_v23 = vpop.eup %3324 }
0x148e   : > { %v2231_v24 = vmul.f32 %v2229_v22, %v2202_v6  ;;  %v2228_v40 = vadd.f32 1.0, %v3325_v23 }
0x1490   : > { %v2233_v27 = vmul.f32 %v2231_v24, %v2231_v24  ;;  %v2230_v10 = vmul.f32 %v2228_v40, %v2214_v25 }
0x1492   : > { %2235 = vadd.xlane.f32.xlu0 %v2233_v27  ;;  %v2232_v38 = vmul.f32 %v2230_v10, %v2208_v3 }
0x1494   : > { %v2234_v41 = vmul.f32 %v2232_v38, %v2232_v38 }
0x1496   : > { %v2237_v29 = vsel %vm357_vm0, %v2234_v41, 0.0 }
0x1497   : > { %2238 = vadd.xlane.f32.xlu1 %v2237_v29 }
0x151f   : > { %v2236_v60 = vpop.xlane.xlu0 %2235 }
0x1520   : > { %v2240_v44 = vmax.f32 %v2236_v60, 1e-24 }
0x1522   : > { %3326 = vrsqrt.f32 %v2240_v44 }
0x1524   : > { %v2239_v62 = vpop.xlane.xlu1 %2238 }
0x1525   : > { %v2241_v45 = vmax.f32 %v2239_v62, 1e-24 }
0x1527   : > { %3328 = vrsqrt.f32 %v2241_v45 }
0x152c   : > { %v3327_v46 = vpop.eup %3326 }
0x152d   : > { %v2244_v47 = vmul.f32 %v3327_v46, %v2231_v24 }
0x152f   : > { %2967 = vmatprep.mubr.f32.mxu0 %v2244_v47 }
0x1531   : > { %v3329_v48 = vpop.eup %3328 }
0x1532   : > { %v2245_v50 = vmul.f32 %v3329_v48, %v2232_v38 }
0x1534   : > { %2968 = vmatmul.mubr.f32.vlgmr.msra.gmra.mrb[20].mxu0 %v2245_v50 }
0x1607   : > { %v2969_v51 = vpop.f32.mrb[20].mxu0 }
0x1608   : > { %v2339_v52 = vadd.f32 %v2969_v51, %v3876_v26  ;;  %v2329_v53 = vpop.f32.mrb[21].mxu0  ;;  %v3437_v26 = vmov 0.0|0.0  }
0x1609   : > { %v2338_v54 = vadd.f32 %v2329_v53, %v3879_v28  ;;  %3165 = vmatprep.subr.bf16.mxu1 %v3437_v26  ;;  %v2349_v28 = vld [vmem:[%s4076_s5 + $0x10] sm:$0xff] }
0x160a   : > { %2432 = vst.msk [vmem:[%s309_s12] sm:$0xf] %vm444_vm8, %v2339_v52  ;;  %3167 = vmatpush3.bf16.msra.mxu1 %v3166_v59  ;;  %v3169_v63 = vpack.c.bf16 %v2350_v61, %v2349_v28 }
0x160b   : > { %v2340_v55 = vmul.f32 %v2338_v54, %v2338_v54  ;;  %3168 = vmatprep.subr.bf16.mxu1 %v3437_v26 }
0x160d   : > { %v2341_v56 = vsel %vm440_vm7, %v2340_v55, 0.0 }
0x160e   : > { %2342 = vadd.xlane.f32.xlu0 %v2341_v56  ;;  %3170 = vmatpush3.bf16.msra.mxu1 %v3169_v63 }
0x169b   : > { %v2343_v6 = vpop.xlane.xlu0 %2342 }
0x169c   : > { %v2344_v5 = vmax.f32 %v2343_v6, 1e-24 }
0x169e   : > { %3330 = vrsqrt.f32 %v2344_v5 }
0x16a8   : > { %v3331_v0 = vpop.eup %3330 }
0x16a9   : > { %v2346_v1 = vmul.f32 %v3331_v0, %v2338_v54 }
0x16ab   : > { %2979 = vmatmul.mubr.msk.f32.vlgmr.msra.gmra.mrb[22].mxu1 %vm440_vm7, %v2346_v1 }
0x16ac   : > { %3345 = shalt.err (!%p3342_p3)
}
0x16ad   : > { %s3346_s12 = scalar_lea.hbm %s4000_s23, 64  ;;  %s3350_s22 = scalar_lea.hbm %s4079_s8, 128 }
0x16ae   : > { %p3347_p4 = scmp.ne.s32.totalorder %s4000_s23, %s3346_s12  ;;  %p3351_p9 = scmp.lt.u32.totalorder %s4000_s23, %s4079_s8 }
0x16af   : > { %p3352_p10 = scmp.lt.u32.totalorder %s3350_s22, %s3346_s12  ;;  %p3354_p12 = scmp.lt.u32.totalorder %s3346_s12, %s4000_s23 }
0x16b0   : > { %p3348_p7 = pnand %p3347_p4, %p3524_p5 }
0x16b1   : > { %p3353_p11 = por %p3352_p10, %p3351_p9 }
0x16b2   : > { %p3349_p8 = pneg %p3348_p7 }
0x16b3   : > { %p3355_p13 = por %p3354_p12, %p3353_p11 }
0x16b5   : > { %p3356_p0 = pnand %p3355_p13, %p3349_p8 }
0x16b7   : > { %3359 = shalt.err (!%p3356_p0)
}
0x16b8   : > { %3172 = dma.vmem_to_hbm [thread:$0]  (%p3524_p5), %s2466_s20, 64, %s4000_s23, %s2439_s24   ;;  %v2650_v9 = vld [vmem:[%s4077_s6] ss:$0 sm:$0xff] }
0x16b9   : > { %s2560_s18 = sshll.u32 %s3975_s21, 3  ;;  %s2654_s10 = sshll.u32 %s3507_s9, 7 }
0x16ba   : > { %s302_s17 = scalar_lea.vmem [#allocation2], %s2560_s18  ;;  %s4028_s19 = scalar_lea.hbm %s4078_s7, %s2654_s10 }
0x16bb   : > { %s2452_s22 = sshll.u32 %s302_s17, 4  ;;  %s2434_s20 = scalar_lea.sflag [#allocation3], %s3975_s21  ;;  %s4030_s22 = int_to_ptr.vmem [resolvable:$true] %s2452_s22 }
0x16bc   : > { %s3360_s23 = scalar_lea.vmem %s4030_s22, 128  ;;  %s3440_s9 = smov [#allocation2]  }
0x16bd   : > { %p3361_p1 = scmp.ne.s32.totalorder %s4030_s22, %s3360_s23  ;;  %s3364_s24 = sshll.u32 %s3440_s9, 4  ;;  %s3365_s24 = int_to_ptr.vmem [resolvable:$false] %s3364_s24 }
0x16be   : > { %s3366_s18 = scalar_lea.vmem %s3365_s24, 256  ;;  %p3367_p4 = scmp.lt.s32.totalorder %s4030_s22, %s3365_s24 }
0x16bf   : > { %p3362_p2 = pnand %p3361_p1, %p3524_p5  ;;  %p3368_p7 = scmp.lt.s32.totalorder %s3366_s18, %s3360_s23 }
0x16c1   : > { %p3363_p3 = pneg %p3362_p2  ;;  %p3369_p8 = por %p3368_p7, %p3367_p4 }
0x16c3   : > { %p3370_p9 = pnand %p3369_p8, %p3363_p3 }
0x177e   : > { %v2427_v3 = vpop.f32.mrb[22].mxu1 }
0x177f   : > { %v2428_v4 = vadd.f32 %v2650_v9, %v2427_v3  ;;  %v2980_v8 = vpop.f32.mrb[23].mxu1 }
0x1781   : > { %2431 = vst [vmem:[%s302_s17] sm:$0xff] %v2428_v4 }
0x1782   : > { %3373 = shalt.err (!%p3370_p9)
}
0x1783   : > { %s3374_s21 = scalar_lea.hbm %s4028_s19, 128  ;;  %s3378_s10 = scalar_lea.hbm %s4078_s7, 256 }
0x1784   : > { %p3375_p10 = scmp.ne.s32.totalorder %s4028_s19, %s3374_s21  ;;  %p3379_p13 = scmp.lt.u32.totalorder %s4028_s19, %s4078_s7 }
0x1785   : > { %p3380_p0 = scmp.lt.u32.totalorder %s3378_s10, %s3374_s21  ;;  %p3382_p2 = scmp.lt.u32.totalorder %s3374_s21, %s4028_s19 }
0x1786   : > { %p3376_p11 = pnand %p3375_p10, %p3524_p5 }
0x1787   : > { %p3381_p1 = por %p3380_p0, %p3379_p13 }
0x1788   : > { %p3377_p12 = pneg %p3376_p11 }
0x1789   : > { %p3383_p3 = por %p3382_p2, %p3381_p1 }
0x178b   : > { %p3384_p4 = pnand %p3383_p3, %p3377_p12 }
0x178d   : > { %3387 = shalt.err (!%p3384_p4)
}
0x178e   : > { %3171 = dma.vmem_to_hbm [thread:$0]  (%p3524_p5), %s4030_s22, 128, %s4028_s19, %s2434_s20  }
0x178f PF: > { %p3182_p7 = scmp.ge.s32.totalorder %s3426_s30, 2  ;;  %s2477_s13 = sand.u32 1, %s3414_s27  }
0x1790   : > { %s2478_s23 = scalar_lea.sflag [#allocation3], %s2477_s13 }
0x1791   : > { %p3176_p8 = pnand %p3182_p7, %p3528_p6 }
0x1793   : > { %3405 = dma.done.wait (!%p3176_p8), %s2478_s23, 128  }
0x1794   : > { %3407 = vsyncadd (!%p3176_p8), %s2478_s23, 4294967168  ;;  %s2487_s9 = scalar_lea.sflag [#allocation5], %s2477_s13 }
0x1795   : > { %3409 = dma.done.wait (!%p3176_p8), %s2487_s9, 64  }
0x1796   : > { %3411 = vsyncadd (!%p3176_p8), %s2487_s9, 4294967232  ;;  %p22_p5 = scmp.ge.s32.totalorder %s3511_s11, 4   ;;  %s4096_s27 = smov %s3418_s28 }
0x1797   : > { %s4097_s28 = smov %s3422_s29  ;;  %s4098_s29 = smov %s3522_s14 }
0x1798   : > { %s4099_s30 = smov %s3511_s11  ;;  %24 = sbr.rel (!%p22_p5) target bundleno = 5 (0x5), region = 104 }
0x179f   :  { %2492 = vsyncpa [#allocation3], 1 }
0x17a0   :  { %2494 = vsyncpa [#allocation3 + $0x1], 1 }
0x17a1   :  { %2495 = vsyncpa [#allocation5], 1 }
0x17a2   :  { %2497 = vsyncpa [#allocation5 + $0x1], 1 }

</bundles_post_ra>
